<compile_context>
chip_gen: v5e
topology: v5e:2x2
jax: 0.10.0
libtpu: 0.0.40
codegen_flags: <defaults>
</compile_context>

<pallas_src>
import math

import jax
import jax.numpy as jnp
from jax.experimental import pallas as pl
from jax.experimental.pallas import tpu as pltpu

# ----------------------------- model config ---------------------------------
N_OUTER = 2            # length of input_ids_sequence (outer loop in forward)
NB      = 2            # per-item batch seen by BERT
B       = N_OUTER * NB # outer loop folded into the batch dimension
S       = 8            # sequence length
BS      = B * S        # flattened token count (rows of the 2-D activation slab)
VOCAB   = 64
MAXPOS  = 16
H       = 128          # hidden size (lane-dense; real BioBERT = 768)
NH      = 4            # attention heads
DH      = H // NH
INTER   = 256          # intermediate (FFN) size
LAYERS  = 2
LN_EPS  = 1e-12        # BERT LayerNorm eps


# ----------------------------- kernel helpers --------------------------------
def _layernorm(x, gamma, beta):
    mu = jnp.mean(x, axis=-1, keepdims=True)
    xc = x - mu
    var = jnp.mean(xc * xc, axis=-1, keepdims=True)
    return xc * jax.lax.rsqrt(var + LN_EPS) * gamma + beta


def _gelu(x):
    # TODO(synk): HF BioBERT uses exact erf-GELU; tanh approximation used here.
    return 0.5 * x * (1.0 + jnp.tanh(0.7978845608028654 * (x + 0.044715 * x * x * x)))


# ----------------------------- fused Pallas kernel ---------------------------
def fused_bert_kernel(emb_ref, bias_ref, embg_ref, embb_ref,
                      wqkv_ref, bqkv_ref, wo_ref, bo_ref, ln1g_ref, ln1b_ref,
                      wi_ref, bi_ref, wo2_ref, bo2_ref, ln2g_ref, ln2b_ref,
                      cls_ref, x_scr):
    """One grid step == one BERT encoder layer.

    Activations live as a flat (B*S, H) f32 slab resident in VMEM scratch
    across the layer grid axis; layer weights are streamed per step (bf16)."""
    layer = pl.program_id(0)

    # Layer 0: embedding LayerNorm (embedding dropout == identity, eval mode).
    @pl.when(layer == 0)
    def _():
        x_scr[...] = _layernorm(emb_ref[...], embg_ref[...], embb_ref[...])

    x = x_scr[...]                                   # (BS, H) f32
    xb = x.astype(jnp.bfloat16)
    bias = bias_ref[...]                             # (B, 1, S) additive mask

    # Fused QKV projection: single 2-D MXU matmul (BS, H) @ (H, 3H).
    # 1/sqrt(DH) already folded into the Q columns of wqkv at param-prep time.
    qkv = (jnp.dot(xb, wqkv_ref[...], preferred_element_type=jnp.float32)
           + bqkv_ref[...])                          # (BS, 3H) f32
    qkv3 = qkv.reshape(B, S, 3 * H)                  # leading-dim split: free

    wo = wo_ref[...]                                 # (H, H) bf16
    attn = jnp.zeros((BS, H), jnp.float32)
    for h in range(NH):                              # static head loop (NH=4)
        qh = qkv3[:, :, h * DH:(h + 1) * DH]
        kh = qkv3[:, :, H + h * DH:H + (h + 1) * DH]
        vh = qkv3[:, :, 2 * H + h * DH:2 * H + (h + 1) * DH]
        s = jnp.einsum('bqd,bkd->bqk', qh, kh,
                       preferred_element_type=jnp.float32) + bias
        m = jnp.max(s, axis=-1, keepdims=True)       # softmax in f32 (v5e-safe)
        p = jnp.exp(s - m)
        p = p * pl.reciprocal(jnp.sum(p, axis=-1, keepdims=True), approx=True)
        ctx = jnp.einsum('bqk,bkd->bqd', p, vh,
                         preferred_element_type=jnp.float32)
        # Accumulate per-head output projection (== concat(ctx_h) @ Wo) as a
        # 2-D matmul; avoids any lane-axis concat/relayout of head contexts.
        attn = attn + jnp.dot(ctx.reshape(BS, DH).astype(jnp.bfloat16),
                              wo[h * DH:(h + 1) * DH, :],
                              preferred_element_type=jnp.float32)
    attn = attn + bo_ref[...]
    # attention-output dropout == identity in eval mode
    h1 = _layernorm(x + attn, ln1g_ref[...], ln1b_ref[...])

    inter = _gelu(jnp.dot(h1.astype(jnp.bfloat16), wi_ref[...],
                          preferred_element_type=jnp.float32) + bi_ref[...])
    ff = jnp.dot(inter.astype(jnp.bfloat16), wo2_ref[...],
                 preferred_element_type=jnp.float32) + bo2_ref[...]
    # hidden dropout == identity in eval mode
    x_new = _layernorm(h1 + ff, ln2g_ref[...], ln2b_ref[...])

    x_scr[...] = x_new

    # Only the final layer produces the CLS output (lane-dense (B, H=128)).
    @pl.when(layer == pl.num_programs(0) - 1)
    def _():
        cls_ref[...] = x_new.reshape(B, S, H)[:, 0, :]


# ----------------------------- pallas_call wrapper ----------------------------
def fused_bert_call(emb, bias, params):
    """emb: (B*S, H) f32 summed embeddings; bias: (B, 1, S) additive mask.
    Returns CLS embeddings (B, H) f32 — whole BERT stack in one pallas_call."""

    def layer_w(shape):      # per-layer weight slab, streamed by the layer grid
        return pl.BlockSpec((None,) + shape, lambda l: (l,) + (0,) * len(shape))

    def resident(shape):     # layer-invariant input (same block every step)
        return pl.BlockSpec(shape, lambda l: (0,) * len(shape))

    flops = LAYERS * (2 * BS * H * 3 * H             # QKV projection
                      + 2 * 2 * B * S * S * H        # scores + context
                      + 2 * BS * H * H               # output projection
                      + 2 * 2 * BS * H * INTER)      # FFN
    transcendentals = LAYERS * (NH * B * S * S + BS * INTER)
    bytes_accessed = (2 * LAYERS * (H * 3 * H + H * H + 2 * H * INTER)      # bf16 weights
                      + 4 * LAYERS * (3 * H + 4 * H + INTER)                # biases / LN
                      + 4 * (BS * H + B * S + 2 * H + B * H))               # activations

    grid_spec = pltpu.PrefetchScalarGridSpec(
        num_scalar_prefetch=0,
        grid=(LAYERS,),
        in_specs=[
            resident((BS, H)),           # summed embeddings (flattened tokens)
            resident((B, 1, S)),         # additive attention mask
            resident((1, H)),            # embedding LN gamma
            resident((1, H)),            # embedding LN beta
            layer_w((H, 3 * H)),         # wqkv (bf16, Q pre-scaled)
            layer_w((1, 3 * H)),         # bqkv
            layer_w((H, H)),             # wo (bf16)
            layer_w((1, H)),             # bo
            layer_w((1, H)),             # ln1 gamma
            layer_w((1, H)),             # ln1 beta
            layer_w((H, INTER)),         # wi (bf16)
            layer_w((1, INTER)),         # bi
            layer_w((INTER, H)),         # wo2 (bf16)
            layer_w((1, H)),             # bo2
            layer_w((1, H)),             # ln2 gamma
            layer_w((1, H)),             # ln2 beta
        ],
        out_specs=pl.BlockSpec((B, H), lambda l: (0, 0)),
        scratch_shapes=[pltpu.VMEM((BS, H), jnp.float32)],
    )

    out = pl.pallas_call(
        fused_bert_kernel,
        grid_spec=grid_spec,
        out_shape=jax.ShapeDtypeStruct((B, H), jnp.float32),
        compiler_params=pltpu.CompilerParams(
            dimension_semantics=("arbitrary",)),     # layer axis is sequential
        cost_estimate=pl.CostEstimate(flops=flops,
                                      transcendentals=transcendentals,
                                      bytes_accessed=bytes_accessed),
    )(emb, bias,
      params['emb_ln_g'], params['emb_ln_b'],
      params['wqkv'], params['bqkv'], params['wo'], params['bo'],
      params['ln1_g'], params['ln1_b'],
      params['wi'], params['bi'], params['wo2'], params['bo2'],
      params['ln2_g'], params['ln2_b'])
    return out                                        # (B, H)


# ----------------------------- model glue -------------------------------------
def bert_for_representation(input_ids_sequence, attention_mask_sequence, params):
    """Mirror of BertForRepresentation.forward (non-Longformer branch).
    The outer document loop is folded into the batch; returns (N_OUTER, NB, H)."""
    n_outer, nb, s = input_ids_sequence.shape
    ids = input_ids_sequence.reshape(n_outer * nb, s)
    mask = attention_mask_sequence.reshape(n_outer * nb, s)

    # embeddings (gathers stay in plain JAX glue)
    emb = (params['word_emb'][ids]
           + params['pos_emb'][jnp.arange(s)][None, :, :]
           + params['type_emb'][0][None, None, :]).astype(jnp.float32)
    emb = emb.reshape(n_outer * nb * s, H)           # flat (B*S, H) token slab

    # HF-style additive attention bias: (1 - mask) * large_negative
    bias = ((1.0 - mask.astype(jnp.float32)) * (-1e9))[:, None, :]   # (B, 1, S)

    cls = fused_bert_call(emb, bias, params)         # (B, H)
    # self.dropout(...) on CLS -> identity in eval mode
    return cls.reshape(n_outer, nb, H)


# ----------------------------- deterministic params ---------------------------
def init_params(key):
    def nrm(k, shape, scale=0.02):
        return scale * jax.random.normal(k, shape, dtype=jnp.float32)

    keys = jax.random.split(key, 3 + LAYERS)
    params = {
        'word_emb': nrm(keys[0], (VOCAB, H)),
        'pos_emb':  nrm(keys[1], (MAXPOS, H)),
        'type_emb': nrm(keys[2], (2, H)),
        'emb_ln_g': jnp.ones((1, H), jnp.float32),
        'emb_ln_b': jnp.zeros((1, H), jnp.float32),
    }

    att_scale = 1.0 / math.sqrt(DH)   # folded into Wq (and bq) at prep time
    wqkv, bqkv, wo, bo = [], [], [], []
    ln1g, ln1b, wi, bi, wo2, bo2, ln2g, ln2b = [], [], [], [], [], [], [], []
    for l in range(LAYERS):
        lk = jax.random.split(keys[3 + l], 6)
        wq = nrm(lk[0], (H, H)) * att_scale
        wk = nrm(lk[1], (H, H))
        wv = nrm(lk[2], (H, H))
        wqkv.append(jnp.concatenate([wq, wk, wv], axis=1))       # (H, 3H)
        bqkv.append(jnp.zeros((1, 3 * H), jnp.float32))          # bq scaled too (zero)
        wo.append(nrm(lk[3], (H, H)))
        bo.append(jnp.zeros((1, H), jnp.float32))
        ln1g.append(jnp.ones((1, H), jnp.float32))
        ln1b.append(jnp.zeros((1, H), jnp.float32))
        wi.append(nrm(lk[4], (H, INTER)))
        bi.append(jnp.zeros((1, INTER), jnp.float32))
        wo2.append(nrm(lk[5], (INTER, H)))
        bo2.append(jnp.zeros((1, H), jnp.float32))
        ln2g.append(jnp.ones((1, H), jnp.float32))
        ln2b.append(jnp.zeros((1, H), jnp.float32))

    params.update({
        'wqkv': jnp.stack(wqkv).astype(jnp.bfloat16),
        'bqkv': jnp.stack(bqkv),
        'wo':   jnp.stack(wo).astype(jnp.bfloat16),
        'bo':   jnp.stack(bo),
        'ln1_g': jnp.stack(ln1g), 'ln1_b': jnp.stack(ln1b),
        'wi':   jnp.stack(wi).astype(jnp.bfloat16),
        'bi':   jnp.stack(bi),
        'wo2':  jnp.stack(wo2).astype(jnp.bfloat16),
        'bo2':  jnp.stack(bo2),
        'ln2_g': jnp.stack(ln2g), 'ln2_b': jnp.stack(ln2b),
    })
    return params


# ----------------------------- main --------------------------------------------
if __name__ == "__main__":
    key = jax.random.PRNGKey(0)
    k_params, k_ids = jax.random.split(key)

    params = init_params(k_params)

    input_ids_sequence = jax.random.randint(
        k_ids, (N_OUTER, NB, S), 0, VOCAB, dtype=jnp.int32)

    # deterministic attention masks: valid prefixes of varying lengths
    lengths = jnp.array([[S, 6], [5, S]], dtype=jnp.int32)        # (N_OUTER, NB)
    attention_mask_sequence = (
        jnp.arange(S)[None, None, :] < lengths[:, :, None]).astype(jnp.int32)

    out = bert_for_representation(input_ids_sequence,
                                  attention_mask_sequence, params)
    jax.block_until_ready(out)

    assert out.shape == (N_OUTER, NB, H), out.shape
    assert out.dtype == jnp.float32
    assert bool(jnp.all(jnp.isfinite(out)))
    print("KERNEL_OK")
</pallas_src>

<mosaic_0001>
module attributes {stable_mosaic.version = 11 : i64} {
  func.func @fused_bert_kernel(%arg0: i32, %arg1: memref<32x128xf32, #tpu.memory_space<vmem>>, %arg2: memref<4x1x8xf32, #tpu.memory_space<vmem>>, %arg3: memref<1x128xf32, #tpu.memory_space<vmem>>, %arg4: memref<1x128xf32, #tpu.memory_space<vmem>>, %arg5: memref<1x128x384xbf16, #tpu.memory_space<vmem>>, %arg6: memref<1x1x384xf32, #tpu.memory_space<vmem>>, %arg7: memref<1x128x128xbf16, #tpu.memory_space<vmem>>, %arg8: memref<1x1x128xf32, #tpu.memory_space<vmem>>, %arg9: memref<1x1x128xf32, #tpu.memory_space<vmem>>, %arg10: memref<1x1x128xf32, #tpu.memory_space<vmem>>, %arg11: memref<1x128x256xbf16, #tpu.memory_space<vmem>>, %arg12: memref<1x1x256xf32, #tpu.memory_space<vmem>>, %arg13: memref<1x256x128xbf16, #tpu.memory_space<vmem>>, %arg14: memref<1x1x128xf32, #tpu.memory_space<vmem>>, %arg15: memref<1x1x128xf32, #tpu.memory_space<vmem>>, %arg16: memref<1x1x128xf32, #tpu.memory_space<vmem>>, %arg17: memref<4x128xf32, #tpu.memory_space<vmem>>, %arg18: memref<32x128xf32, #tpu.memory_space<vmem>>) attributes {dimension_semantics = [#tpu.dimension_semantics<arbitrary>], iteration_bounds = array<i64: 2>, scalar_prefetch = 0 : i64, scratch_operands = 1 : i64, tpu.core_type = #tpu.core_type<tc>, window_params = [{pipeline_mode = #tpu.pipeline_mode<synchronous>, transform_indices = @transform_0, window_bounds = array<i64: 32, 128>}, {pipeline_mode = #tpu.pipeline_mode<synchronous>, transform_indices = @transform_1, window_bounds = array<i64: 4, 1, 8>}, {pipeline_mode = #tpu.pipeline_mode<synchronous>, transform_indices = @transform_2, window_bounds = array<i64: 1, 128>}, {pipeline_mode = #tpu.pipeline_mode<synchronous>, transform_indices = @transform_3, window_bounds = array<i64: 1, 128>}, {transform_indices = @transform_4, window_bounds = array<i64: 1, 128, 384>}, {transform_indices = @transform_5, window_bounds = array<i64: 1, 1, 384>}, {transform_indices = @transform_6, window_bounds = array<i64: 1, 128, 128>}, {transform_indices = @transform_7, window_bounds = array<i64: 1, 1, 128>}, {transform_indices = @transform_8, window_bounds = array<i64: 1, 1, 128>}, {transform_indices = @transform_9, window_bounds = array<i64: 1, 1, 128>}, {transform_indices = @transform_10, window_bounds = array<i64: 1, 128, 256>}, {transform_indices = @transform_11, window_bounds = array<i64: 1, 1, 256>}, {transform_indices = @transform_12, window_bounds = array<i64: 1, 256, 128>}, {transform_indices = @transform_13, window_bounds = array<i64: 1, 1, 128>}, {transform_indices = @transform_14, window_bounds = array<i64: 1, 1, 128>}, {transform_indices = @transform_15, window_bounds = array<i64: 1, 1, 128>}, {pipeline_mode = #tpu.pipeline_mode<synchronous>, transform_indices = @transform_16, window_bounds = array<i64: 4, 128>}]} {
    %c0_i32 = arith.constant 0 : i32
    %0 = arith.cmpi eq, %arg0, %c0_i32 : i32
    %1 = arith.extui %0 : i1 to i32
    %c0_i32_0 = arith.constant 0 : i32
    %2 = arith.cmpi ne, %1, %c0_i32_0 : i32
    scf.if %2 {
      %c0_81 = arith.constant 0 : index
      %c0_82 = arith.constant 0 : index
      %192 = vector.load %arg1[%c0_81, %c0_82] : memref<32x128xf32, #tpu.memory_space<vmem>>, vector<32x128xf32>
      %c0_83 = arith.constant 0 : index
      %c0_84 = arith.constant 0 : index
      %193 = vector.load %arg3[%c0_83, %c0_84] : memref<1x128xf32, #tpu.memory_space<vmem>>, vector<1x128xf32>
      %c0_85 = arith.constant 0 : index
      %c0_86 = arith.constant 0 : index
      %194 = vector.load %arg4[%c0_85, %c0_86] : memref<1x128xf32, #tpu.memory_space<vmem>>, vector<1x128xf32>
      %cst_87 = arith.constant dense<0.000000e+00> : vector<32xf32>
      %195 = vector.multi_reduction <add>, %192, %cst_87 [1] : vector<32x128xf32> to vector<32xf32>
      %196 = vector.shape_cast %195 : vector<32xf32> to vector<32x1xf32>
      %cst_88 = arith.constant 1.280000e+02 : f32
      %197 = vector.broadcast %cst_88 : f32 to vector<32x1xf32>
      %198 = arith.divf %196, %197 : vector<32x1xf32>
      %199 = vector.broadcast %198 : vector<32x1xf32> to vector<32x128xf32>
      %200 = arith.subf %192, %199 : vector<32x128xf32>
      %201 = arith.mulf %200, %200 : vector<32x128xf32>
      %cst_89 = arith.constant dense<0.000000e+00> : vector<32xf32>
      %202 = vector.multi_reduction <add>, %201, %cst_89 [1] : vector<32x128xf32> to vector<32xf32>
      %203 = vector.shape_cast %202 : vector<32xf32> to vector<32x1xf32>
      %cst_90 = arith.constant 1.280000e+02 : f32
      %204 = vector.broadcast %cst_90 : f32 to vector<32x1xf32>
      %205 = arith.divf %203, %204 : vector<32x1xf32>
      %cst_91 = arith.constant 9.99999996E-13 : f32
      %206 = vector.broadcast %cst_91 : f32 to vector<32x1xf32>
      %207 = arith.addf %205, %206 : vector<32x1xf32>
      %208 = math.rsqrt %207 : vector<32x1xf32>
      %209 = vector.broadcast %208 : vector<32x1xf32> to vector<32x128xf32>
      %210 = arith.mulf %200, %209 : vector<32x128xf32>
      %211 = vector.broadcast %193 : vector<1x128xf32> to vector<32x128xf32>
      %212 = arith.mulf %210, %211 : vector<32x128xf32>
      %213 = vector.broadcast %194 : vector<1x128xf32> to vector<32x128xf32>
      %214 = arith.addf %212, %213 : vector<32x128xf32>
      %c0_92 = arith.constant 0 : index
      %c0_93 = arith.constant 0 : index
      %215 = vector.load %arg18[%c0_92, %c0_93] : memref<32x128xf32, #tpu.memory_space<vmem>>, vector<32x128xf32>
      tpu.vector_store %arg18[%c0_92, %c0_93], %214 {strides = array<i32>} : memref<32x128xf32, #tpu.memory_space<vmem>>, vector<32x128xf32>,
    } else {
    }
    %c0 = arith.constant 0 : index
    %c0_1 = arith.constant 0 : index
    %3 = vector.load %arg18[%c0, %c0_1] : memref<32x128xf32, #tpu.memory_space<vmem>>, vector<32x128xf32>
    %4 = arith.truncf %3 : vector<32x128xf32> to vector<32x128xbf16>
    %c0_2 = arith.constant 0 : index
    %c0_3 = arith.constant 0 : index
    %c0_4 = arith.constant 0 : index
    %5 = vector.load %arg2[%c0_2, %c0_3, %c0_4] : memref<4x1x8xf32, #tpu.memory_space<vmem>>, vector<4x1x8xf32>
    %c0_5 = arith.constant 0 : index
    %c0_6 = arith.constant 0 : index
    %c0_7 = arith.constant 0 : index
    %6 = vector.load %arg5[%c0_5, %c0_6, %c0_7] : memref<1x128x384xbf16, #tpu.memory_space<vmem>>, vector<1x128x384xbf16>
    %7 = vector.shape_cast %6 : vector<1x128x384xbf16> to vector<128x384xbf16>
    %cst = arith.constant dense<0.000000e+00> : vector<32x384xf32>
    %8 = tpu.matmul %4, %7, %cst {dimension_numbers = #tpu.dot_dimension_numbers<[1], [0], [0], [1], [0, 0, 1, 1], [], []>} : vector<32x128xbf16>, vector<128x384xbf16>, vector<32x384xf32> -> vector<32x384xf32>
    %c0_8 = arith.constant 0 : index
    %c0_9 = arith.constant 0 : index
    %c0_10 = arith.constant 0 : index
    %9 = vector.load %arg6[%c0_8, %c0_9, %c0_10] : memref<1x1x384xf32, #tpu.memory_space<vmem>>, vector<1x1x384xf32>
    %10 = vector.shape_cast %9 : vector<1x1x384xf32> to vector<1x384xf32>
    %11 = vector.broadcast %10 : vector<1x384xf32> to vector<32x384xf32>
    %12 = arith.addf %8, %11 : vector<32x384xf32>
    %13 = vector.shape_cast %12 : vector<32x384xf32> to vector<4x8x384xf32>
    %c0_11 = arith.constant 0 : index
    %c0_12 = arith.constant 0 : index
    %c0_13 = arith.constant 0 : index
    %14 = vector.load %arg7[%c0_11, %c0_12, %c0_13] : memref<1x128x128xbf16, #tpu.memory_space<vmem>>, vector<1x128x128xbf16>
    %15 = vector.shape_cast %14 : vector<1x128x128xbf16> to vector<128x128xbf16>
    %cst_14 = arith.constant 0.000000e+00 : f32
    %16 = vector.broadcast %cst_14 : f32 to vector<32x128xf32>
    %17 = vector.extract_strided_slice %13 {offsets = [0, 0, 0], sizes = [4, 8, 32], strides = [1, 1, 1]} : vector<4x8x384xf32> to vector<4x8x32xf32>
    %18 = vector.extract_strided_slice %13 {offsets = [0, 0, 128], sizes = [4, 8, 32], strides = [1, 1, 1]} : vector<4x8x384xf32> to vector<4x8x32xf32>
    %19 = vector.extract_strided_slice %13 {offsets = [0, 0, 256], sizes = [4, 8, 32], strides = [1, 1, 1]} : vector<4x8x384xf32> to vector<4x8x32xf32>
    "tpu.trace_start"() <{level = 10 : i32, message = "bqd,bkd->bqk"}> : () -> ()
    %cst_15 = arith.constant dense<0.000000e+00> : vector<4x8x8xf32>
    %20 = tpu.matmul %17, %18, %cst_15 {dimension_numbers = #tpu.dot_dimension_numbers<[2], [2], [1], [1], [0, 0, 0, 1, 1, 1], [0], [0]>} : vector<4x8x32xf32>, vector<4x8x32xf32>, vector<4x8x8xf32> -> vector<4x8x8xf32>
    "tpu.trace_stop"() : () -> ()
    %21 = vector.broadcast %5 : vector<4x1x8xf32> to vector<4x8x8xf32>
    %22 = arith.addf %20, %21 : vector<4x8x8xf32>
    %cst_16 = arith.constant dense<0xFF800000> : vector<4x8xf32>
    %23 = vector.multi_reduction <maximumf>, %22, %cst_16 [2] : vector<4x8x8xf32> to vector<4x8xf32>
    %24 = vector.shape_cast %23 : vector<4x8xf32> to vector<4x8x1xf32>
    %25 = vector.broadcast %24 : vector<4x8x1xf32> to vector<4x8x8xf32>
    %26 = arith.subf %22, %25 : vector<4x8x8xf32>
    %27 = math.exp %26 : vector<4x8x8xf32>
    %cst_17 = arith.constant dense<0.000000e+00> : vector<4x8xf32>
    %28 = vector.multi_reduction <add>, %27, %cst_17 [2] : vector<4x8x8xf32> to vector<4x8xf32>
    %29 = vector.shape_cast %28 : vector<4x8xf32> to vector<4x8x1xf32>
    %30 = tpu.reciprocal %29 {approx = true} : vector<4x8x1xf32> -> vector<4x8x1xf32>
    %31 = vector.broadcast %30 : vector<4x8x1xf32> to vector<4x8x8xf32>
    %32 = arith.mulf %27, %31 : vector<4x8x8xf32>
    "tpu.trace_start"() <{level = 10 : i32, message = "bqk,bkd->bqd"}> : () -> ()
    %cst_18 = arith.constant dense<0.000000e+00> : vector<4x8x32xf32>
    %33 = tpu.matmul %32, %19, %cst_18 {dimension_numbers = #tpu.dot_dimension_numbers<[2], [1], [1], [2], [0, 0, 0, 1, 1, 2], [0], [0]>} : vector<4x8x8xf32>, vector<4x8x32xf32>, vector<4x8x32xf32> -> vector<4x8x32xf32>
    "tpu.trace_stop"() : () -> ()
    %34 = vector.shape_cast %33 : vector<4x8x32xf32> to vector<32x32xf32>
    %35 = arith.truncf %34 : vector<32x32xf32> to vector<32x32xbf16>
    %36 = vector.extract_strided_slice %15 {offsets = [0, 0], sizes = [32, 128], strides = [1, 1]} : vector<128x128xbf16> to vector<32x128xbf16>
    %cst_19 = arith.constant dense<0.000000e+00> : vector<32x128xf32>
    %37 = tpu.matmul %35, %36, %cst_19 {dimension_numbers = #tpu.dot_dimension_numbers<[1], [0], [0], [1], [0, 0, 1, 1], [], []>} : vector<32x32xbf16>, vector<32x128xbf16>, vector<32x128xf32> -> vector<32x128xf32>
    %38 = arith.addf %16, %37 : vector<32x128xf32>
    %39 = vector.extract_strided_slice %13 {offsets = [0, 0, 32], sizes = [4, 8, 32], strides = [1, 1, 1]} : vector<4x8x384xf32> to vector<4x8x32xf32>
    %40 = vector.extract_strided_slice %13 {offsets = [0, 0, 160], sizes = [4, 8, 32], strides = [1, 1, 1]} : vector<4x8x384xf32> to vector<4x8x32xf32>
    %41 = vector.extract_strided_slice %13 {offsets = [0, 0, 288], sizes = [4, 8, 32], strides = [1, 1, 1]} : vector<4x8x384xf32> to vector<4x8x32xf32>
    "tpu.trace_start"() <{level = 10 : i32, message = "bqd,bkd->bqk"}> : () -> ()
    %cst_20 = arith.constant dense<0.000000e+00> : vector<4x8x8xf32>
    %42 = tpu.matmul %39, %40, %cst_20 {dimension_numbers = #tpu.dot_dimension_numbers<[2], [2], [1], [1], [0, 0, 0, 1, 1, 1], [0], [0]>} : vector<4x8x32xf32>, vector<4x8x32xf32>, vector<4x8x8xf32> -> vector<4x8x8xf32>
    "tpu.trace_stop"() : () -> ()
    %43 = vector.broadcast %5 : vector<4x1x8xf32> to vector<4x8x8xf32>
    %44 = arith.addf %42, %43 : vector<4x8x8xf32>
    %cst_21 = arith.constant dense<0xFF800000> : vector<4x8xf32>
    %45 = vector.multi_reduction <maximumf>, %44, %cst_21 [2] : vector<4x8x8xf32> to vector<4x8xf32>
    %46 = vector.shape_cast %45 : vector<4x8xf32> to vector<4x8x1xf32>
    %47 = vector.broadcast %46 : vector<4x8x1xf32> to vector<4x8x8xf32>
    %48 = arith.subf %44, %47 : vector<4x8x8xf32>
    %49 = math.exp %48 : vector<4x8x8xf32>
    %cst_22 = arith.constant dense<0.000000e+00> : vector<4x8xf32>
    %50 = vector.multi_reduction <add>, %49, %cst_22 [2] : vector<4x8x8xf32> to vector<4x8xf32>
    %51 = vector.shape_cast %50 : vector<4x8xf32> to vector<4x8x1xf32>
    %52 = tpu.reciprocal %51 {approx = true} : vector<4x8x1xf32> -> vector<4x8x1xf32>
    %53 = vector.broadcast %52 : vector<4x8x1xf32> to vector<4x8x8xf32>
    %54 = arith.mulf %49, %53 : vector<4x8x8xf32>
    "tpu.trace_start"() <{level = 10 : i32, message = "bqk,bkd->bqd"}> : () -> ()
    %cst_23 = arith.constant dense<0.000000e+00> : vector<4x8x32xf32>
    %55 = tpu.matmul %54, %41, %cst_23 {dimension_numbers = #tpu.dot_dimension_numbers<[2], [1], [1], [2], [0, 0, 0, 1, 1, 2], [0], [0]>} : vector<4x8x8xf32>, vector<4x8x32xf32>, vector<4x8x32xf32> -> vector<4x8x32xf32>
    "tpu.trace_stop"() : () -> ()
    %56 = vector.shape_cast %55 : vector<4x8x32xf32> to vector<32x32xf32>
    %57 = arith.truncf %56 : vector<32x32xf32> to vector<32x32xbf16>
    %58 = vector.extract_strided_slice %15 {offsets = [32, 0], sizes = [32, 128], strides = [1, 1]} : vector<128x128xbf16> to vector<32x128xbf16>
    %cst_24 = arith.constant dense<0.000000e+00> : vector<32x128xf32>
    %59 = tpu.matmul %57, %58, %cst_24 {dimension_numbers = #tpu.dot_dimension_numbers<[1], [0], [0], [1], [0, 0, 1, 1], [], []>} : vector<32x32xbf16>, vector<32x128xbf16>, vector<32x128xf32> -> vector<32x128xf32>
    %60 = arith.addf %38, %59 : vector<32x128xf32>
    %61 = vector.extract_strided_slice %13 {offsets = [0, 0, 64], sizes = [4, 8, 32], strides = [1, 1, 1]} : vector<4x8x384xf32> to vector<4x8x32xf32>
    %62 = vector.extract_strided_slice %13 {offsets = [0, 0, 192], sizes = [4, 8, 32], strides = [1, 1, 1]} : vector<4x8x384xf32> to vector<4x8x32xf32>
    %63 = vector.extract_strided_slice %13 {offsets = [0, 0, 320], sizes = [4, 8, 32], strides = [1, 1, 1]} : vector<4x8x384xf32> to vector<4x8x32xf32>
    "tpu.trace_start"() <{level = 10 : i32, message = "bqd,bkd->bqk"}> : () -> ()
    %cst_25 = arith.constant dense<0.000000e+00> : vector<4x8x8xf32>
    %64 = tpu.matmul %61, %62, %cst_25 {dimension_numbers = #tpu.dot_dimension_numbers<[2], [2], [1], [1], [0, 0, 0, 1, 1, 1], [0], [0]>} : vector<4x8x32xf32>, vector<4x8x32xf32>, vector<4x8x8xf32> -> vector<4x8x8xf32>
    "tpu.trace_stop"() : () -> ()
    %65 = vector.broadcast %5 : vector<4x1x8xf32> to vector<4x8x8xf32>
    %66 = arith.addf %64, %65 : vector<4x8x8xf32>
    %cst_26 = arith.constant dense<0xFF800000> : vector<4x8xf32>
    %67 = vector.multi_reduction <maximumf>, %66, %cst_26 [2] : vector<4x8x8xf32> to vector<4x8xf32>
    %68 = vector.shape_cast %67 : vector<4x8xf32> to vector<4x8x1xf32>
    %69 = vector.broadcast %68 : vector<4x8x1xf32> to vector<4x8x8xf32>
    %70 = arith.subf %66, %69 : vector<4x8x8xf32>
    %71 = math.exp %70 : vector<4x8x8xf32>
    %cst_27 = arith.constant dense<0.000000e+00> : vector<4x8xf32>
    %72 = vector.multi_reduction <add>, %71, %cst_27 [2] : vector<4x8x8xf32> to vector<4x8xf32>
    %73 = vector.shape_cast %72 : vector<4x8xf32> to vector<4x8x1xf32>
    %74 = tpu.reciprocal %73 {approx = true} : vector<4x8x1xf32> -> vector<4x8x1xf32>
    %75 = vector.broadcast %74 : vector<4x8x1xf32> to vector<4x8x8xf32>
    %76 = arith.mulf %71, %75 : vector<4x8x8xf32>
    "tpu.trace_start"() <{level = 10 : i32, message = "bqk,bkd->bqd"}> : () -> ()
    %cst_28 = arith.constant dense<0.000000e+00> : vector<4x8x32xf32>
    %77 = tpu.matmul %76, %63, %cst_28 {dimension_numbers = #tpu.dot_dimension_numbers<[2], [1], [1], [2], [0, 0, 0, 1, 1, 2], [0], [0]>} : vector<4x8x8xf32>, vector<4x8x32xf32>, vector<4x8x32xf32> -> vector<4x8x32xf32>
    "tpu.trace_stop"() : () -> ()
    %78 = vector.shape_cast %77 : vector<4x8x32xf32> to vector<32x32xf32>
    %79 = arith.truncf %78 : vector<32x32xf32> to vector<32x32xbf16>
    %80 = vector.extract_strided_slice %15 {offsets = [64, 0], sizes = [32, 128], strides = [1, 1]} : vector<128x128xbf16> to vector<32x128xbf16>
    %cst_29 = arith.constant dense<0.000000e+00> : vector<32x128xf32>
    %81 = tpu.matmul %79, %80, %cst_29 {dimension_numbers = #tpu.dot_dimension_numbers<[1], [0], [0], [1], [0, 0, 1, 1], [], []>} : vector<32x32xbf16>, vector<32x128xbf16>, vector<32x128xf32> -> vector<32x128xf32>
    %82 = arith.addf %60, %81 : vector<32x128xf32>
    %83 = vector.extract_strided_slice %13 {offsets = [0, 0, 96], sizes = [4, 8, 32], strides = [1, 1, 1]} : vector<4x8x384xf32> to vector<4x8x32xf32>
    %84 = vector.extract_strided_slice %13 {offsets = [0, 0, 224], sizes = [4, 8, 32], strides = [1, 1, 1]} : vector<4x8x384xf32> to vector<4x8x32xf32>
    %85 = vector.extract_strided_slice %13 {offsets = [0, 0, 352], sizes = [4, 8, 32], strides = [1, 1, 1]} : vector<4x8x384xf32> to vector<4x8x32xf32>
    "tpu.trace_start"() <{level = 10 : i32, message = "bqd,bkd->bqk"}> : () -> ()
    %cst_30 = arith.constant dense<0.000000e+00> : vector<4x8x8xf32>
    %86 = tpu.matmul %83, %84, %cst_30 {dimension_numbers = #tpu.dot_dimension_numbers<[2], [2], [1], [1], [0, 0, 0, 1, 1, 1], [0], [0]>} : vector<4x8x32xf32>, vector<4x8x32xf32>, vector<4x8x8xf32> -> vector<4x8x8xf32>
    "tpu.trace_stop"() : () -> ()
    %87 = vector.broadcast %5 : vector<4x1x8xf32> to vector<4x8x8xf32>
    %88 = arith.addf %86, %87 : vector<4x8x8xf32>
    %cst_31 = arith.constant dense<0xFF800000> : vector<4x8xf32>
    %89 = vector.multi_reduction <maximumf>, %88, %cst_31 [2] : vector<4x8x8xf32> to vector<4x8xf32>
    %90 = vector.shape_cast %89 : vector<4x8xf32> to vector<4x8x1xf32>
    %91 = vector.broadcast %90 : vector<4x8x1xf32> to vector<4x8x8xf32>
    %92 = arith.subf %88, %91 : vector<4x8x8xf32>
    %93 = math.exp %92 : vector<4x8x8xf32>
    %cst_32 = arith.constant dense<0.000000e+00> : vector<4x8xf32>
    %94 = vector.multi_reduction <add>, %93, %cst_32 [2] : vector<4x8x8xf32> to vector<4x8xf32>
    %95 = vector.shape_cast %94 : vector<4x8xf32> to vector<4x8x1xf32>
    %96 = tpu.reciprocal %95 {approx = true} : vector<4x8x1xf32> -> vector<4x8x1xf32>
    %97 = vector.broadcast %96 : vector<4x8x1xf32> to vector<4x8x8xf32>
    %98 = arith.mulf %93, %97 : vector<4x8x8xf32>
    "tpu.trace_start"() <{level = 10 : i32, message = "bqk,bkd->bqd"}> : () -> ()
    %cst_33 = arith.constant dense<0.000000e+00> : vector<4x8x32xf32>
    %99 = tpu.matmul %98, %85, %cst_33 {dimension_numbers = #tpu.dot_dimension_numbers<[2], [1], [1], [2], [0, 0, 0, 1, 1, 2], [0], [0]>} : vector<4x8x8xf32>, vector<4x8x32xf32>, vector<4x8x32xf32> -> vector<4x8x32xf32>
    "tpu.trace_stop"() : () -> ()
    %100 = vector.shape_cast %99 : vector<4x8x32xf32> to vector<32x32xf32>
    %101 = arith.truncf %100 : vector<32x32xf32> to vector<32x32xbf16>
    %102 = vector.extract_strided_slice %15 {offsets = [96, 0], sizes = [32, 128], strides = [1, 1]} : vector<128x128xbf16> to vector<32x128xbf16>
    %cst_34 = arith.constant dense<0.000000e+00> : vector<32x128xf32>
    %103 = tpu.matmul %101, %102, %cst_34 {dimension_numbers = #tpu.dot_dimension_numbers<[1], [0], [0], [1], [0, 0, 1, 1], [], []>} : vector<32x32xbf16>, vector<32x128xbf16>, vector<32x128xf32> -> vector<32x128xf32>
    %104 = arith.addf %82, %103 : vector<32x128xf32>
    %c0_35 = arith.constant 0 : index
    %c0_36 = arith.constant 0 : index
    %c0_37 = arith.constant 0 : index
    %105 = vector.load %arg8[%c0_35, %c0_36, %c0_37] : memref<1x1x128xf32, #tpu.memory_space<vmem>>, vector<1x1x128xf32>
    %106 = vector.shape_cast %105 : vector<1x1x128xf32> to vector<1x128xf32>
    %107 = vector.broadcast %106 : vector<1x128xf32> to vector<32x128xf32>
    %108 = arith.addf %104, %107 : vector<32x128xf32>
    %109 = arith.addf %3, %108 : vector<32x128xf32>
    %c0_38 = arith.constant 0 : index
    %c0_39 = arith.constant 0 : index
    %c0_40 = arith.constant 0 : index
    %110 = vector.load %arg9[%c0_38, %c0_39, %c0_40] : memref<1x1x128xf32, #tpu.memory_space<vmem>>, vector<1x1x128xf32>
    %111 = vector.shape_cast %110 : vector<1x1x128xf32> to vector<1x128xf32>
    %c0_41 = arith.constant 0 : index
    %c0_42 = arith.constant 0 : index
    %c0_43 = arith.constant 0 : index
    %112 = vector.load %arg10[%c0_41, %c0_42, %c0_43] : memref<1x1x128xf32, #tpu.memory_space<vmem>>, vector<1x1x128xf32>
    %113 = vector.shape_cast %112 : vector<1x1x128xf32> to vector<1x128xf32>
    %cst_44 = arith.constant dense<0.000000e+00> : vector<32xf32>
    %114 = vector.multi_reduction <add>, %109, %cst_44 [1] : vector<32x128xf32> to vector<32xf32>
    %115 = vector.shape_cast %114 : vector<32xf32> to vector<32x1xf32>
    %cst_45 = arith.constant 1.280000e+02 : f32
    %116 = vector.broadcast %cst_45 : f32 to vector<32x1xf32>
    %117 = arith.divf %115, %116 : vector<32x1xf32>
    %118 = vector.broadcast %117 : vector<32x1xf32> to vector<32x128xf32>
    %119 = arith.subf %109, %118 : vector<32x128xf32>
    %120 = arith.mulf %119, %119 : vector<32x128xf32>
    %cst_46 = arith.constant dense<0.000000e+00> : vector<32xf32>
    %121 = vector.multi_reduction <add>, %120, %cst_46 [1] : vector<32x128xf32> to vector<32xf32>
    %122 = vector.shape_cast %121 : vector<32xf32> to vector<32x1xf32>
    %cst_47 = arith.constant 1.280000e+02 : f32
    %123 = vector.broadcast %cst_47 : f32 to vector<32x1xf32>
    %124 = arith.divf %122, %123 : vector<32x1xf32>
    %cst_48 = arith.constant 9.99999996E-13 : f32
    %125 = vector.broadcast %cst_48 : f32 to vector<32x1xf32>
    %126 = arith.addf %124, %125 : vector<32x1xf32>
    %127 = math.rsqrt %126 : vector<32x1xf32>
    %128 = vector.broadcast %127 : vector<32x1xf32> to vector<32x128xf32>
    %129 = arith.mulf %119, %128 : vector<32x128xf32>
    %130 = vector.broadcast %111 : vector<1x128xf32> to vector<32x128xf32>
    %131 = arith.mulf %129, %130 : vector<32x128xf32>
    %132 = vector.broadcast %113 : vector<1x128xf32> to vector<32x128xf32>
    %133 = arith.addf %131, %132 : vector<32x128xf32>
    %134 = arith.truncf %133 : vector<32x128xf32> to vector<32x128xbf16>
    %c0_49 = arith.constant 0 : index
    %c0_50 = arith.constant 0 : index
    %c0_51 = arith.constant 0 : index
    %135 = vector.load %arg11[%c0_49, %c0_50, %c0_51] : memref<1x128x256xbf16, #tpu.memory_space<vmem>>, vector<1x128x256xbf16>
    %136 = vector.shape_cast %135 : vector<1x128x256xbf16> to vector<128x256xbf16>
    %cst_52 = arith.constant dense<0.000000e+00> : vector<32x256xf32>
    %137 = tpu.matmul %134, %136, %cst_52 {dimension_numbers = #tpu.dot_dimension_numbers<[1], [0], [0], [1], [0, 0, 1, 1], [], []>} : vector<32x128xbf16>, vector<128x256xbf16>, vector<32x256xf32> -> vector<32x256xf32>
    %c0_53 = arith.constant 0 : index
    %c0_54 = arith.constant 0 : index
    %c0_55 = arith.constant 0 : index
    %138 = vector.load %arg12[%c0_53, %c0_54, %c0_55] : memref<1x1x256xf32, #tpu.memory_space<vmem>>, vector<1x1x256xf32>
    %139 = vector.shape_cast %138 : vector<1x1x256xf32> to vector<1x256xf32>
    %140 = vector.broadcast %139 : vector<1x256xf32> to vector<32x256xf32>
    %141 = arith.addf %137, %140 : vector<32x256xf32>
    %cst_56 = arith.constant 5.000000e-01 : f32
    %142 = vector.broadcast %cst_56 : f32 to vector<32x256xf32>
    %143 = arith.mulf %142, %141 : vector<32x256xf32>
    %cst_57 = arith.constant 4.471500e-02 : f32
    %144 = vector.broadcast %cst_57 : f32 to vector<32x256xf32>
    %145 = arith.mulf %144, %141 : vector<32x256xf32>
    %146 = arith.mulf %145, %141 : vector<32x256xf32>
    %147 = arith.mulf %146, %141 : vector<32x256xf32>
    %148 = arith.addf %141, %147 : vector<32x256xf32>
    %cst_58 = arith.constant 0.797884583 : f32
    %149 = vector.broadcast %cst_58 : f32 to vector<32x256xf32>
    %150 = arith.mulf %149, %148 : vector<32x256xf32>
    %151 = math.tanh %150 : vector<32x256xf32>
    %cst_59 = arith.constant 1.000000e+00 : f32
    %152 = vector.broadcast %cst_59 : f32 to vector<32x256xf32>
    %153 = arith.addf %152, %151 : vector<32x256xf32>
    %154 = arith.mulf %143, %153 : vector<32x256xf32>
    %155 = arith.truncf %154 : vector<32x256xf32> to vector<32x256xbf16>
    %c0_60 = arith.constant 0 : index
    %c0_61 = arith.constant 0 : index
    %c0_62 = arith.constant 0 : index
    %156 = vector.load %arg13[%c0_60, %c0_61, %c0_62] : memref<1x256x128xbf16, #tpu.memory_space<vmem>>, vector<1x256x128xbf16>
    %157 = vector.shape_cast %156 : vector<1x256x128xbf16> to vector<256x128xbf16>
    %cst_63 = arith.constant dense<0.000000e+00> : vector<32x128xf32>
    %158 = tpu.matmul %155, %157, %cst_63 {dimension_numbers = #tpu.dot_dimension_numbers<[1], [0], [0], [1], [0, 0, 1, 1], [], []>} : vector<32x256xbf16>, vector<256x128xbf16>, vector<32x128xf32> -> vector<32x128xf32>
    %c0_64 = arith.constant 0 : index
    %c0_65 = arith.constant 0 : index
    %c0_66 = arith.constant 0 : index
    %159 = vector.load %arg14[%c0_64, %c0_65, %c0_66] : memref<1x1x128xf32, #tpu.memory_space<vmem>>, vector<1x1x128xf32>
    %160 = vector.shape_cast %159 : vector<1x1x128xf32> to vector<1x128xf32>
    %161 = vector.broadcast %160 : vector<1x128xf32> to vector<32x128xf32>
    %162 = arith.addf %158, %161 : vector<32x128xf32>
    %163 = arith.addf %133, %162 : vector<32x128xf32>
    %c0_67 = arith.constant 0 : index
    %c0_68 = arith.constant 0 : index
    %c0_69 = arith.constant 0 : index
    %164 = vector.load %arg15[%c0_67, %c0_68, %c0_69] : memref<1x1x128xf32, #tpu.memory_space<vmem>>, vector<1x1x128xf32>
    %165 = vector.shape_cast %164 : vector<1x1x128xf32> to vector<1x128xf32>
    %c0_70 = arith.constant 0 : index
    %c0_71 = arith.constant 0 : index
    %c0_72 = arith.constant 0 : index
    %166 = vector.load %arg16[%c0_70, %c0_71, %c0_72] : memref<1x1x128xf32, #tpu.memory_space<vmem>>, vector<1x1x128xf32>
    %167 = vector.shape_cast %166 : vector<1x1x128xf32> to vector<1x128xf32>
    %cst_73 = arith.constant dense<0.000000e+00> : vector<32xf32>
    %168 = vector.multi_reduction <add>, %163, %cst_73 [1] : vector<32x128xf32> to vector<32xf32>
    %169 = vector.shape_cast %168 : vector<32xf32> to vector<32x1xf32>
    %cst_74 = arith.constant 1.280000e+02 : f32
    %170 = vector.broadcast %cst_74 : f32 to vector<32x1xf32>
    %171 = arith.divf %169, %170 : vector<32x1xf32>
    %172 = vector.broadcast %171 : vector<32x1xf32> to vector<32x128xf32>
    %173 = arith.subf %163, %172 : vector<32x128xf32>
    %174 = arith.mulf %173, %173 : vector<32x128xf32>
    %cst_75 = arith.constant dense<0.000000e+00> : vector<32xf32>
    %175 = vector.multi_reduction <add>, %174, %cst_75 [1] : vector<32x128xf32> to vector<32xf32>
    %176 = vector.shape_cast %175 : vector<32xf32> to vector<32x1xf32>
    %cst_76 = arith.constant 1.280000e+02 : f32
    %177 = vector.broadcast %cst_76 : f32 to vector<32x1xf32>
    %178 = arith.divf %176, %177 : vector<32x1xf32>
    %cst_77 = arith.constant 9.99999996E-13 : f32
    %179 = vector.broadcast %cst_77 : f32 to vector<32x1xf32>
    %180 = arith.addf %178, %179 : vector<32x1xf32>
    %181 = math.rsqrt %180 : vector<32x1xf32>
    %182 = vector.broadcast %181 : vector<32x1xf32> to vector<32x128xf32>
    %183 = arith.mulf %173, %182 : vector<32x128xf32>
    %184 = vector.broadcast %165 : vector<1x128xf32> to vector<32x128xf32>
    %185 = arith.mulf %183, %184 : vector<32x128xf32>
    %186 = vector.broadcast %167 : vector<1x128xf32> to vector<32x128xf32>
    %187 = arith.addf %185, %186 : vector<32x128xf32>
    %c0_78 = arith.constant 0 : index
    %c0_79 = arith.constant 0 : index
    %188 = vector.load %arg18[%c0_78, %c0_79] : memref<32x128xf32, #tpu.memory_space<vmem>>, vector<32x128xf32>
    tpu.vector_store %arg18[%c0_78, %c0_79], %187 {strides = array<i32>} : memref<32x128xf32, #tpu.memory_space<vmem>>, vector<32x128xf32>,
    %c1_i32 = arith.constant 1 : i32
    %189 = arith.cmpi eq, %arg0, %c1_i32 : i32
    %190 = arith.extui %189 : i1 to i32
    %c0_i32_80 = arith.constant 0 : i32
    %191 = arith.cmpi ne, %190, %c0_i32_80 : i32
    scf.if %191 {
      %192 = vector.shape_cast %187 : vector<32x128xf32> to vector<4x8x128xf32>
      %193 = vector.extract_strided_slice %192 {offsets = [0, 0, 0], sizes = [4, 1, 128], strides = [1, 1, 1]} : vector<4x8x128xf32> to vector<4x1x128xf32>
      %194 = vector.shape_cast %193 : vector<4x1x128xf32> to vector<4x128xf32>
      %c0_81 = arith.constant 0 : index
      %c0_82 = arith.constant 0 : index
      %195 = vector.load %arg17[%c0_81, %c0_82] : memref<4x128xf32, #tpu.memory_space<vmem>>, vector<4x128xf32>
      tpu.vector_store %arg17[%c0_81, %c0_82], %194 {strides = array<i32>} : memref<4x128xf32, #tpu.memory_space<vmem>>, vector<4x128xf32>,
    } else {
    }
    return
  }
  func.func @transform_0(%arg0: i32) -> (i32, i32) {
    %c0_i32 = arith.constant 0 : i32
    %c0_i32_0 = arith.constant 0 : i32
    %c0_i32_1 = arith.constant 0 : i32
    return %c0_i32, %c0_i32_0 : i32, i32
  }
  func.func @transform_1(%arg0: i32) -> (i32, i32, i32) {
    %c0_i32 = arith.constant 0 : i32
    %c0_i32_0 = arith.constant 0 : i32
    %c0_i32_1 = arith.constant 0 : i32
    %c0_i32_2 = arith.constant 0 : i32
    return %c0_i32, %c0_i32_0, %c0_i32_1 : i32, i32, i32
  }
  func.func @transform_2(%arg0: i32) -> (i32, i32) {
    %c0_i32 = arith.constant 0 : i32
    %c0_i32_0 = arith.constant 0 : i32
    %c0_i32_1 = arith.constant 0 : i32
    return %c0_i32, %c0_i32_0 : i32, i32
  }
  func.func @transform_3(%arg0: i32) -> (i32, i32) {
    %c0_i32 = arith.constant 0 : i32
    %c0_i32_0 = arith.constant 0 : i32
    %c0_i32_1 = arith.constant 0 : i32
    return %c0_i32, %c0_i32_0 : i32, i32
  }
  func.func @transform_4(%arg0: i32) -> (i32, i32, i32) {
    %c0_i32 = arith.constant 0 : i32
    %c0_i32_0 = arith.constant 0 : i32
    %c0_i32_1 = arith.constant 0 : i32
    return %arg0, %c0_i32, %c0_i32_0 : i32, i32, i32
  }
  func.func @transform_5(%arg0: i32) -> (i32, i32, i32) {
    %c0_i32 = arith.constant 0 : i32
    %c0_i32_0 = arith.constant 0 : i32
    %c0_i32_1 = arith.constant 0 : i32
    return %arg0, %c0_i32, %c0_i32_0 : i32, i32, i32
  }
  func.func @transform_6(%arg0: i32) -> (i32, i32, i32) {
    %c0_i32 = arith.constant 0 : i32
    %c0_i32_0 = arith.constant 0 : i32
    %c0_i32_1 = arith.constant 0 : i32
    return %arg0, %c0_i32, %c0_i32_0 : i32, i32, i32
  }
  func.func @transform_7(%arg0: i32) -> (i32, i32, i32) {
    %c0_i32 = arith.constant 0 : i32
    %c0_i32_0 = arith.constant 0 : i32
    %c0_i32_1 = arith.constant 0 : i32
    return %arg0, %c0_i32, %c0_i32_0 : i32, i32, i32
  }
  func.func @transform_8(%arg0: i32) -> (i32, i32, i32) {
    %c0_i32 = arith.constant 0 : i32
    %c0_i32_0 = arith.constant 0 : i32
    %c0_i32_1 = arith.constant 0 : i32
    return %arg0, %c0_i32, %c0_i32_0 : i32, i32, i32
  }
  func.func @transform_9(%arg0: i32) -> (i32, i32, i32) {
    %c0_i32 = arith.constant 0 : i32
    %c0_i32_0 = arith.constant 0 : i32
    %c0_i32_1 = arith.constant 0 : i32
    return %arg0, %c0_i32, %c0_i32_0 : i32, i32, i32
  }
  func.func @transform_10(%arg0: i32) -> (i32, i32, i32) {
    %c0_i32 = arith.constant 0 : i32
    %c0_i32_0 = arith.constant 0 : i32
    %c0_i32_1 = arith.constant 0 : i32
    return %arg0, %c0_i32, %c0_i32_0 : i32, i32, i32
  }
  func.func @transform_11(%arg0: i32) -> (i32, i32, i32) {
    %c0_i32 = arith.constant 0 : i32
    %c0_i32_0 = arith.constant 0 : i32
    %c0_i32_1 = arith.constant 0 : i32
    return %arg0, %c0_i32, %c0_i32_0 : i32, i32, i32
  }
  func.func @transform_12(%arg0: i32) -> (i32, i32, i32) {
    %c0_i32 = arith.constant 0 : i32
    %c0_i32_0 = arith.constant 0 : i32
    %c0_i32_1 = arith.constant 0 : i32
    return %arg0, %c0_i32, %c0_i32_0 : i32, i32, i32
  }
  func.func @transform_13(%arg0: i32) -> (i32, i32, i32) {
    %c0_i32 = arith.constant 0 : i32
    %c0_i32_0 = arith.constant 0 : i32
    %c0_i32_1 = arith.constant 0 : i32
    return %arg0, %c0_i32, %c0_i32_0 : i32, i32, i32
  }
  func.func @transform_14(%arg0: i32) -> (i32, i32, i32) {
    %c0_i32 = arith.constant 0 : i32
    %c0_i32_0 = arith.constant 0 : i32
    %c0_i32_1 = arith.constant 0 : i32
    return %arg0, %c0_i32, %c0_i32_0 : i32, i32, i32
  }
  func.func @transform_15(%arg0: i32) -> (i32, i32, i32) {
    %c0_i32 = arith.constant 0 : i32
    %c0_i32_0 = arith.constant 0 : i32
    %c0_i32_1 = arith.constant 0 : i32
    return %arg0, %c0_i32, %c0_i32_0 : i32, i32, i32
  }
  func.func @transform_16(%arg0: i32) -> (i32, i32) {
    %c0_i32 = arith.constant 0 : i32
    %c0_i32_0 = arith.constant 0 : i32
    %c0_i32_1 = arith.constant 0 : i32
    return %c0_i32, %c0_i32_0 : i32, i32
  }
}

</mosaic_0001>

<bundles_post_ra>
// kernel: tpu_custom_call.1
= control target key start
LH: loop header
LB: loop body
LE: loop exit
PB: predicated region body
PF: predicated region fallthrough
CT: control target
= control target key end

     0   :  { %s5280_s0 = inlined_call_operand.hbm [shape: f32[32,128], index: 0, kind: input, shape index: {}]   ;;  %s5281_s1 = inlined_call_operand.hbm [shape: f32[4,1,8], index: 1, kind: input, shape index: {}]   ;;  %s5282_s2 = inlined_call_operand.hbm [shape: f32[1,128], index: 2, kind: input, shape index: {}]   ;;  %s5283_s3 = inlined_call_operand.hbm [shape: f32[1,128], index: 3, kind: input, shape index: {}]   ;;  %s5284_s4 = inlined_call_operand.hbm [shape: bf16[2,128,384], index: 4, kind: input, shape index: {}]   ;;  %s5285_s5 = inlined_call_operand.hbm [shape: f32[2,1,384], index: 5, kind: input, shape index: {}]   ;;  %s5286_s6 = inlined_call_operand.hbm [shape: bf16[2,128,128], index: 6, kind: input, shape index: {}]   ;;  %s5287_s7 = inlined_call_operand.vmem [shape: f32[2,1,128], index: 7, kind: input, shape index: {}]   ;;  %s5288_s8 = inlined_call_operand.hbm [shape: f32[2,1,128], index: 8, kind: input, shape index: {}]   ;;  %s5289_s9 = inlined_call_operand.vmem [shape: f32[2,1,128], index: 9, kind: input, shape index: {}]   ;;  %s5290_s10 = inlined_call_operand.hbm [shape: bf16[2,128,256], index: 10, kind: input, shape index: {}]   ;;  %s5291_s11 = inlined_call_operand.vmem [shape: f32[2,1,256], index: 11, kind: input, shape index: {}]   ;;  %s5292_s12 = inlined_call_operand.hbm [shape: bf16[2,256,128], index: 12, kind: input, shape index: {}]   ;;  %s5293_s13 = inlined_call_operand.vmem [shape: f32[2,1,128], index: 13, kind: input, shape index: {}]   ;;  %s5294_s14 = inlined_call_operand.vmem [shape: f32[2,1,128], index: 14, kind: input, shape index: {}]   ;;  %s5295_s15 = inlined_call_operand.vmem [shape: f32[2,1,128], index: 15, kind: input, shape index: {}]   ;;  %s5296_s16 = inlined_call_operand.hbm [shape: f32[4,128], index: 16, kind: output, shape index: {}]  }
   0x1   :  { %5311 = sst [smem:[#allocation30_spill]] %s5280_s0 }
   0x2   :  { %5312 = sst [smem:[#allocation31_spill]] %s5281_s1 }
   0x3   :  { %5313 = sst [smem:[#allocation32_spill]] %s5282_s2 }
   0x4   :  { %5314 = sst [smem:[#allocation33_spill]] %s5283_s3 }
   0x5   :  { %5315 = sst [smem:[#allocation34_spill]] %s5284_s4 }
   0x6   :  { %5316 = sst [smem:[#allocation35_spill]] %s5285_s5 }
   0x7   :  { %5317 = sst [smem:[#allocation36_spill]] %s5286_s6 }
   0x8   :  { %5318 = sst [smem:[#allocation37_spill]] %s5287_s7 }
   0x9   :  { %5319 = sst [smem:[#allocation38_spill]] %s5289_s9 }
   0xa   :  { %5320 = sst [smem:[#allocation39_spill]] %s5291_s11 }
   0xb   :  { %5321 = sst [smem:[#allocation40_spill]] %s5292_s12 }
   0xc   :  { %5322 = sst [smem:[#allocation41_spill]] %s5293_s13 }
   0xd   :  { %5323 = sst [smem:[#allocation42_spill]] %s5294_s14 }
   0xe   :  { %5324 = sst [smem:[#allocation43_spill]] %s5295_s15 }
   0xf   :  { %5325 = sst [smem:[#allocation44_spill]] %s5296_s16 }
  0x10   :  { %21 = vsyncpa [#allocation4], 0 }
  0x11   :  { %22 = vsyncpa [#allocation7], 0 }
  0x12   :  { %23 = vsyncpa [#allocation10], 0 }
  0x13   :  { %24 = vsyncpa [#allocation5], 0  ;;  %s4466_s21 = smov 0   ;;  %s4468_s22 = smov 0  }
  0x14   :  { %s4470_s23 = smov 0   ;;  %s4472_s24 = smov 0  }
  0x15 LB: > { %5326 = sst [smem:[#allocation23_spill]] %s4353_s22  ;;  %s4485_s25 = sadd.s32 4294967295, %s4361_s24   ;;  %s4361_s24 = sphi %s4472_s24, %s5371_s24   ;;  %s4357_s23 = sphi %s4470_s23, %s5374_s23   ;;  %s4353_s22 = sphi %s4468_s22, %s5373_s22   ;;  %s4349_s21 = sphi %s4466_s21, %s5372_s21  }
  0x16   : > { %5327 = sst [smem:[#allocation24_spill]] %s4357_s23  ;;  %s4488_s26 = sadd.s32 1, %s4361_s24  }
  0x17   : > { %5328 = sst [smem:[#allocation25_spill]] %s4485_s25  ;;  %s118_s27 = ssub.s32 %s4361_s24, %s4488_s26 }
  0x18   : > { %5329 = sst [smem:[#allocation26_spill]] %s4488_s26  ;;  %s121_s28 = sadd.s32 1, %s4357_s23 }
  0x19   : > { %p119_p0 = scmp.eq.s32.totalorder %s118_s27, 0  ;;  %p128_p1 = scmp.ne.s32.totalorder %s4357_s23, %s4353_s22 }
  0x1a   : > { %p129_p2 = scmp.eq.s32.totalorder %s4361_s24, 0  ;;  %p134_p3 = scmp.ne.s32.totalorder %s4353_s22, %s4349_s21 }
  0x1b   : > { %s4498_s29 = scalar_select %p119_p0, %s4357_s23, %s121_s28  }
  0x1c   : > { %p4500_p4 = por %p129_p2, %p128_p1  ;;  %p135_p5 = scmp.eq.s32.totalorder %s4485_s25, 0 }
  0x1d   : > { %5330 = sst [smem:[#allocation27_spill]] %s4498_s29  ;;  %p3308_p6 = scmp.ge.s32.totalorder %s4361_s24, 1 }
  0x1e   : > { %p452_p7 = scmp.lt.s32.totalorder %s4361_s24, 3  ;;  %p4509_p8 = por %p135_p5, %p134_p3 }
  0x1f   : > { %s5336_s20 = sld [smem:[#allocation30_spill]]  ;;  %s4363_s27 = smov [#allocation3]  }
  0x20   : > { %s5332_s0 = scalar_select %p4509_p8, 1, 0 }
  0x21   : > { %p4514_p10 = pnand %p3308_p6, %p452_p7  ;;  %s465_s28 = sshll.u32 %s4363_s27, 4  ;;  %s466_s28 = int_to_ptr.vmem [resolvable:$true] %s465_s28 }
  0x22   : > { %5333 = sst [smem:[#allocation28_spill]] %s5332_s0  ;;  %p3792_p13 = scmp.lt.s32.totalorder %s4361_s24, 2 }
  0x23   : > { %s5334_s17 = scalar_select %p4514_p10, 1, 0 }
  0x24   : > { %p3756_p11 = pneg %p4514_p10  ;;  %s517_s26 = sand.u32 1, %s4361_s24  }
  0x25   : > { %5335 = sst [smem:[#allocation29_spill]] %s5334_s17  ;;  %s463_s21 = sshll.u32 %s5336_s20, 4  ;;  %s464_s21 = int_to_ptr.hbm [resolvable:$true] %s463_s21 }
  0x26   : > { %p4525_p12 = pnand %p3756_p11, %p135_p5  ;;  %s5301_s16 = smov 128  }
  0x27   : > { %s5302_s15 = smov 8   ;;  %s4537_s18 = sand.u32 1, %s4357_s23  }
  0x28   : > { %3759 = dma.hbm_to_vmem [thread:$0]  (!%p4525_p12), %s464_s21, 512, %s466_s28, [#allocation4], %s5301_s16, %s5301_s16, %s5302_s15  }
  0x29   : > { %s3718_s19 = smul.u32 192, %s4537_s18  ;;  %p4542_p0 = pnand %p3792_p13, %p4500_p4 }
  0x2a   : > { %s3719_s27 = smul.u32 192, %s4361_s24  ;;  %s5339_s4 = sld [smem:[#allocation34_spill]] }
  0x2b   : > { %s521_s9 = scalar_lea.vmem [#allocation11], %s3718_s19  ;;  %s4550_s21 = scalar_lea.sflag [#allocation4], %s517_s26 }
  0x2c   : > { %s529_s7 = sshll.u32 %s521_s9, 4  ;;  %p4554_p2 = pneg %p4542_p0  ;;  %s530_s7 = int_to_ptr.vmem [resolvable:$true] %s529_s7 }
  0x30   : > { %s526_s13 = scalar_lea.hbm %s5339_s4, %s3719_s27 }
  0x31   : > { %s527_s0 = sshll.u32 %s526_s13, 4  ;;  %s4020_s13 = scalar_lea.hbm %s5339_s4, 384  ;;  %s528_s0 = int_to_ptr.hbm [resolvable:$true] %s527_s0 }
  0x32   : > { %s4013_s28 = sshra.s32 %s528_s0, 4  ;;  %s4014_s28 = int_to_ptr.hbm [resolvable:$true] %s4013_s28 }
  0x33   : > { %s4015_s30 = scalar_lea.hbm %s4014_s28, 192  ;;  %p4021_p6 = scmp.lt.s32.totalorder %s4014_s28, %s5339_s4 }
  0x34   : > { %p4016_p1 = scmp.ne.s32.totalorder %s4014_s28, %s4015_s30  ;;  %p4022_p7 = scmp.lt.s32.totalorder %s4020_s13, %s4015_s30 }
  0x36   : > { %p4018_p3 = pnand %p4554_p2, %p4016_p1  ;;  %p4023_p11 = por %p4022_p7, %p4021_p6 }
  0x38   : > { %p4019_p4 = pneg %p4018_p3 }
  0x3a   : > { %p4024_p13 = pnand %p4023_p11, %p4019_p4 }
  0x3c   : > { %4027 = shalt.err (!%p4024_p13)
}
  0x3d   : > { %s4366_s19 = smov 192   ;;  %s4367_s27 = smov 12  }
  0x3e   : > { %3772 = dma.hbm_to_vmem [thread:$0]  (!%p4542_p0), %s528_s0, 3072, %s530_s7, %s4550_s21, %s4366_s19, %s4366_s19, %s4367_s27  }
  0x3f   : > { %s3720_s11 = smul.u32 3, %s4537_s18  ;;  %s3315_s9 = sshll.u32 %s4537_s18, 6 }
  0x40   : > { %s3721_s15 = smul.u32 3, %s4361_s24  ;;  %s3651_s14 = sshll.u32 %s4361_s24, 6 }
  0x41   : > { %s5341_s5 = sld [smem:[#allocation35_spill]]  ;;  %s543_s26 = scalar_lea.vmem [#allocation12], %s3720_s11 }
  0x42   : > { %s551_s4 = sshll.u32 %s543_s26, 4  ;;  %s5342_s6 = sld [smem:[#allocation36_spill]]  ;;  %s552_s4 = int_to_ptr.vmem [resolvable:$true] %s551_s4 }
  0x47   : > { %s547_s13 = scalar_lea.hbm %s5341_s5, %s3721_s15  ;;  %s4050_s15 = scalar_lea.hbm %s5341_s5, 6 }
  0x48   : > { %s549_s23 = sshll.u32 %s547_s13, 4  ;;  %s567_s17 = scalar_lea.hbm %s5342_s6, %s3651_s14  ;;  %s550_s23 = int_to_ptr.hbm [resolvable:$true] %s549_s23 }
  0x49   : > { %s4043_s12 = sshra.s32 %s550_s23, 4  ;;  %s4044_s12 = int_to_ptr.hbm [resolvable:$true] %s4043_s12 }
  0x4a   : > { %s4045_s7 = scalar_lea.hbm %s4044_s12, 3  ;;  %p4051_p6 = scmp.lt.s32.totalorder %s4044_s12, %s5341_s5 }
  0x4b   : > { %p4046_p1 = scmp.ne.s32.totalorder %s4044_s12, %s4045_s7  ;;  %p4052_p7 = scmp.lt.s32.totalorder %s4050_s15, %s4045_s7 }
  0x4d   : > { %p4048_p3 = pnand %p4046_p1, %p4554_p2  ;;  %p4053_p11 = por %p4052_p7, %p4051_p6 }
  0x4f   : > { %p4049_p4 = pneg %p4048_p3 }
  0x51   : > { %p4054_p13 = pnand %p4053_p11, %p4049_p4 }
  0x53   : > { %4057 = shalt.err (!%p4054_p13)
}
  0x54   : > { %3775 = dma.hbm_to_vmem [thread:$0]  (!%p4542_p0), %s550_s23, 48, %s552_s4, %s4550_s21  }
  0x55   : > { %s568_s22 = sshll.u32 %s567_s17, 4  ;;  %s562_s25 = scalar_lea.vmem [#allocation13], %s3315_s9  ;;  %s569_s22 = int_to_ptr.hbm [resolvable:$true] %s568_s22 }
  0x56   : > { %s570_s14 = sshll.u32 %s562_s25, 4  ;;  %s4073_s28 = sshra.s32 %s569_s22, 4  ;;  %s571_s14 = int_to_ptr.vmem [resolvable:$true] %s570_s14  ;;  %s4074_s28 = int_to_ptr.hbm [resolvable:$true] %s4073_s28 }
  0x57   : > { %s4075_s30 = scalar_lea.hbm %s4074_s28, 64  ;;  %s4080_s26 = scalar_lea.hbm %s5342_s6, 128 }
  0x58   : > { %p4076_p1 = scmp.ne.s32.totalorder %s4074_s28, %s4075_s30  ;;  %p4081_p4 = scmp.lt.s32.totalorder %s4074_s28, %s5342_s6 }
  0x59   : > { %p4082_p6 = scmp.lt.s32.totalorder %s4080_s26, %s4075_s30 }
  0x5a   : > { %p4078_p3 = pnand %p4076_p1, %p4554_p2 }
  0x5b   : > { %p4083_p7 = por %p4082_p6, %p4081_p4 }
  0x5c   : > { %p4079_p9 = pneg %p4078_p3 }
  0x5e   : > { %p4084_p11 = pnand %p4083_p7, %p4079_p9 }
  0x60   : > { %4087 = shalt.err (!%p4084_p11)
}
  0x61   : > { %s5309_s4 = smov 64   ;;  %s5310_s23 = smov 4  }
  0x62   : > { %3778 = dma.hbm_to_vmem [thread:$0]  (!%p4542_p0), %s569_s22, 1024, %s571_s14, %s4550_s21, %s5309_s4, %s5309_s4, %s5310_s23  }
  0x63   : > { %s592_s19 = scalar_lea.hbm %s5288_s8, %s4361_s24  ;;  %s589_s27 = scalar_lea.vmem [#allocation14], %s4537_s18 }
  0x64   : > { %s594_s15 = sshll.u32 %s592_s19, 4  ;;  %s596_s11 = sshll.u32 %s589_s27, 4  ;;  %s595_s15 = int_to_ptr.hbm [resolvable:$true] %s594_s15  ;;  %s597_s11 = int_to_ptr.vmem [resolvable:$true] %s596_s11 }
  0x65   : > { %s4103_s25 = sshra.s32 %s595_s15, 4  ;;  %s4110_s22 = scalar_lea.hbm %s5288_s8, 2  ;;  %s4104_s25 = int_to_ptr.hbm [resolvable:$true] %s4103_s25 }
  0x66   : > { %s4105_s28 = scalar_lea.hbm %s4104_s25, 1  ;;  %p4111_p3 = scmp.lt.s32.totalorder %s4104_s25, %s5288_s8 }
  0x67   : > { %p4106_p9 = scmp.ne.s32.totalorder %s4104_s25, %s4105_s28  ;;  %p4112_p4 = scmp.lt.s32.totalorder %s4110_s22, %s4105_s28 }
  0x69   : > { %p4108_p13 = pnand %p4106_p9, %p4554_p2  ;;  %p4113_p6 = por %p4112_p4, %p4111_p3 }
  0x6b   : > { %p4109_p1 = pneg %p4108_p13 }
  0x6d   : > { %p4114_p7 = pnand %p4113_p6, %p4109_p1 }
  0x6f   : > { %4117 = shalt.err (!%p4114_p7)
}
  0x70   : > { %3781 = dma.hbm_to_vmem [thread:$0]  (!%p4542_p0), %s595_s15, 16, %s597_s11, %s4550_s21  }
  0x71   : > { %s5343_s1 = sld [smem:[#allocation31_spill]]  ;;  %s4370_s17 = smov [#allocation6]  }
  0x72   : > { %s479_s9 = sshll.u32 %s4370_s17, 4  ;;  %s3318_s19 = sshll.u32 %s4537_s18, 7  ;;  %s480_s9 = int_to_ptr.vmem [resolvable:$true] %s479_s9 }
  0x73   : > { %s4371_s27 = smov 16   ;;  %s4372_s25 = smov 1  }
  0x74   : > { %s3652_s28 = sshll.u32 %s4361_s24, 7  ;;  %s613_s11 = scalar_lea.vmem [#allocation15], %s3318_s19 }
  0x75   : > { %s618_s15 = scalar_lea.hbm %s5290_s10, %s3652_s28  ;;  %s621_s22 = sshll.u32 %s613_s11, 4  ;;  %s622_s22 = int_to_ptr.vmem [resolvable:$true] %s621_s22 }
  0x76   : > { %s619_s14 = sshll.u32 %s618_s15, 4  ;;  %s5344_s2 = sld [smem:[#allocation32_spill]]  ;;  %s620_s14 = int_to_ptr.hbm [resolvable:$true] %s619_s14 }
  0x77   : > { %s477_s0 = sshll.u32 %s5343_s1, 4  ;;  %s4163_s17 = sshra.s32 %s620_s14, 4  ;;  %s478_s0 = int_to_ptr.hbm [resolvable:$true] %s477_s0  ;;  %s4164_s17 = int_to_ptr.hbm [resolvable:$true] %s4163_s17 }
  0x78   : > { %3762 = dma.hbm_to_vmem [thread:$0]  (!%p4525_p12), %s478_s0, 64, %s480_s9, [#allocation7], %s4371_s27, %s4371_s27, %s4372_s25  }
  0x79   : > { %s4165_s4 = scalar_lea.hbm %s4164_s17, 128  ;;  %s4170_s27 = scalar_lea.hbm %s5290_s10, 256 }
  0x7a   : > { %p4166_p11 = scmp.ne.s32.totalorder %s4164_s17, %s4165_s4  ;;  %p4171_p1 = scmp.lt.s32.totalorder %s4164_s17, %s5290_s10 }
  0x7b   : > { %p4172_p3 = scmp.lt.s32.totalorder %s4170_s27, %s4165_s4 }
  0x7c   : > { %s492_s7 = sshll.u32 %s5344_s2, 4  ;;  %p4168_p9 = pnand %p4166_p11, %p4554_p2  ;;  %s493_s7 = int_to_ptr.hbm [resolvable:$true] %s492_s7 }
  0x7d   : > { %p4173_p4 = por %p4172_p3, %p4171_p1 }
  0x7e   : > { %p4169_p13 = pneg %p4168_p9 }
  0x80   : > { %p4174_p6 = pnand %p4173_p4, %p4169_p13 }
  0x82   : > { %4177 = shalt.err (!%p4174_p6)
}
  0x83   : > { %s5345_s12 = smov 8   ;;  %s5346_s15 = smov 128  }
  0x84   : > { %3784 = dma.hbm_to_vmem [thread:$0]  (!%p4542_p0), %s620_s14, 2048, %s622_s22, %s4550_s21, %s5346_s15, %s5346_s15, %s5345_s12  }
  0x85   : > { %s4373_s11 = smov [#allocation8]   ;;  %s5347_s3 = sld [smem:[#allocation33_spill]] }
  0x86   : > { %s494_s13 = sshll.u32 %s4373_s11, 4  ;;  %s4374_s0 = smov [#allocation9]   ;;  %s495_s13 = int_to_ptr.vmem [resolvable:$true] %s494_s13 }
  0x87   : > { %3765 = dma.hbm_to_vmem [thread:$0]  (!%p4525_p12), %s493_s7, 16, %s495_s13, [#allocation7]  }
  0x88   : > { %s506_s9 = sshll.u32 %s4374_s0, 4  ;;  %s5348_s30 = sld [smem:[#allocation40_spill]]  ;;  %s507_s9 = int_to_ptr.vmem [resolvable:$true] %s506_s9 }
  0x89   : > { %s642_s14 = scalar_lea.vmem [#allocation16], %s3318_s19 }
  0x8a   : > { %s650_s12 = sshll.u32 %s642_s14, 4  ;;  %s651_s12 = int_to_ptr.vmem [resolvable:$true] %s650_s12 }
  0x8b   : > { %s504_s4 = sshll.u32 %s5347_s3, 4  ;;  %s505_s4 = int_to_ptr.hbm [resolvable:$true] %s504_s4 }
  0x8c   : > { %3768 = dma.hbm_to_vmem [thread:$0]  (!%p4525_p12), %s505_s4, 16, %s507_s9, [#allocation10]  }
  0x8e   : > { %s647_s23 = scalar_lea.hbm %s5348_s30, %s3652_s28  ;;  %s4260_s28 = scalar_lea.hbm %s5348_s30, 256 }
  0x8f   : > { %s648_s22 = sshll.u32 %s647_s23, 4  ;;  %s649_s22 = int_to_ptr.hbm [resolvable:$true] %s648_s22 }
  0x90   : > { %s4253_s15 = sshra.s32 %s649_s22, 4  ;;  %s4254_s15 = int_to_ptr.hbm [resolvable:$true] %s4253_s15 }
  0x91   : > { %s4255_s11 = scalar_lea.hbm %s4254_s15, 128  ;;  %p4261_p12 = scmp.lt.s32.totalorder %s4254_s15, %s5348_s30 }
  0x92   : > { %p4256_p7 = scmp.ne.s32.totalorder %s4254_s15, %s4255_s11  ;;  %p4262_p13 = scmp.lt.s32.totalorder %s4260_s28, %s4255_s11 }
  0x94   : > { %p4258_p11 = pnand %p4256_p7, %p4554_p2  ;;  %p4263_p1 = por %p4262_p13, %p4261_p12 }
  0x96   : > { %p4259_p9 = pneg %p4258_p11 }
  0x98   : > { %p4264_p3 = pnand %p4263_p1, %p4259_p9 }
  0x9a   : > { %4267 = shalt.err (!%p4264_p3)
}
  0x9b   : > { %s5349_s29 = smov 4   ;;  %s5350_s18 = smov 64  }
  0x9c   : > { %3787 = dma.hbm_to_vmem [thread:$0]  (!%p4542_p0), %s649_s22, 2048, %s651_s12, %s4550_s21, %s5350_s18, %s5350_s18, %s5349_s29  }
  0x9d   : > { %680 = sbr.rel (%p4514_p10) target bundleno = 3458 (0xd82), region = 84  ;;  %s5352_s19 = sld [smem:[#allocation25_spill]] (!%p4514_p10) }
  0xa2   : > { %4328 = dma.done.wait (%p135_p5), [#allocation4], 512  }
  0xa3   : > { %4330 = vsyncadd (%p135_p5), [#allocation4], 4294966784 }
  0xa4   : > { %4332 = dma.done.wait (%p135_p5), [#allocation7], 80  }
  0xa5   : > { %4334 = vsyncadd (%p135_p5), [#allocation7], 4294967216 }
  0xa6   : > { %4336 = dma.done.wait (%p135_p5), [#allocation10], 16  }
  0xa7   : > { %4338 = vsyncadd (%p135_p5), [#allocation10], 4294967280  ;;  %s5353_s20 = sld [smem:[#allocation23_spill]]  ;;  %s702_s26 = sand.u32 1, %s5352_s19  }
  0xa8   : > { %s703_s0 = scalar_lea.sflag [#allocation4], %s702_s26 }
  0xad   : > { %s4695_s17 = sand.u32 1, %s5353_s20  }
  0xae   : > { %s3722_s4 = smul.u32 192, %s4695_s17 }
  0xb0   : > { %s4698_s9 = scalar_lea.vmem [#allocation11], %s3722_s4 }
  0xb1   : > { %4340 = dma.done.wait (%p4509_p8), %s703_s0, 8256  }
  0xb2   : > { %4342 = vsyncadd (%p4509_p8), %s703_s0, 4294959040  ;;  %s3723_s27 = smul.u32 3, %s4695_s17  ;;  %s3329_s25 = sshll.u32 %s4695_s17, 6 }
  0xb3   : > { %s3330_s22 = sshll.u32 %s4695_s17, 7  ;;  %p843_p5 = scmp.lt.s32.totalorder %s5352_s19, 1 }
  0xb4   : > { %s5356_s13 = sld [smem:[#allocation38_spill]]  ;;  %s4737_s7 = scalar_lea.vmem [#allocation12], %s3723_s27 }
  0xb5   : > { %s4709_s14 = scalar_select %p843_p5, %s5352_s19, 1 }
  0xb6   : > { %s5357_s20 = sld [smem:[#allocation41_spill]]  ;;  %s4739_s28 = scalar_lea.vmem [#allocation13], %s3329_s25 }
  0xb7   : > { %s3332_s29 = sshll.u32 %s4709_s14, 1  ;;  %s5358_s0 = sld [smem:[#allocation39_spill]] }
  0xb8   : > { %s5359_s2 = sld [smem:[#allocation42_spill]]  ;;  %s4742_s18 = scalar_lea.vmem [#allocation15], %s3330_s22 }
  0xb9   : > { %s5360_s24 = sld [smem:[#allocation43_spill]]  ;;  %s4744_s16 = scalar_lea.vmem [#allocation16], %s3330_s22 }
  0xba   : > { %s848_s23 = scalar_lea.vmem %s5356_s13, %s4709_s14  ;;  %s735_s13 = scalar_lea.vmem [#allocation14], %s4695_s17 }
  0xbb   : > { %p5361_p8 = scmp.ne.s32.totalorder %s5352_s19, 0 }
  0xbc   : > { %s855_s21 = scalar_lea.vmem %s5357_s20, %s4709_s14 }
  0xbd   : > { %s4727_s1 = scalar_lea.vmem %s5358_s0, %s3332_s29  ;;  %866 = sbr.rel (%p5361_p8) target bundleno = 471 (0x1d7), region = 128 }
  0xbe   : > { %s858_s3 = scalar_lea.vmem %s5359_s2, %s4709_s14 }
  0xbf   : > { %s861_s6 = scalar_lea.vmem %s5360_s24, %s4709_s14 }
  0xc2   : > { %v869_v0 = vld [vmem:[#allocation3 + $0x10] sm:$0xff]  ;;  %v867_v1 = vld [vmem:[#allocation3] sm:$0xff]  ;;  %v870_v2 = vld [vmem:[#allocation3 + $0x18] sm:$0xff]  ;;  %v4375_v4 = vmov 128.0  }
  0xc3   : > { %877 = vadd.xlane.f32.xlu1 %v869_v0  ;;  %873 = vadd.xlane.f32.xlu0 %v867_v1  ;;  %v868_v3 = vld [vmem:[#allocation3 + $0x8] sm:$0xff]  ;;  %3851 = vrcp.f32 %v4375_v4  ;;  %v3849_v53 = vld [vmem:[#allocation8] ss:$0 sm:$0xff]  ;;  %v3850_v58 = vld [vmem:[#allocation9] ss:$0 sm:$0xff] }
  0xc9   : > { %v3852_v5 = vpop.eup %3851 }
  0xca   : > { %v882_v6 = vmul.f32 128.0, %v3852_v5  ;;  %vm886_vm0 = vweird.f32 %v3852_v5 }
  0xcb   : > { %879 = vadd.xlane.f32.xlu1 %v870_v2  ;;  %875 = vadd.xlane.f32.xlu0 %v868_v3 }
  0xcc   : > { %v883_v7 = vsub.f32 1.0, %v882_v6 }
  0xce   : > { %v884_v8 = vmul.f32 %v3852_v5, %v883_v7 }
  0xd0   : > { %v885_v9 = vadd.f32 %v3852_v5, %v884_v8 }
  0xd2   : > { %v887_v10 = vsel %vm886_vm0, %v3852_v5, %v885_v9 }
 0x136   : > { %v878_v11 = vpop.xlane.xlu1 %877  ;;  %v874_v12 = vpop.xlane.xlu0 %873 }
 0x137   : > { %v890_v13 = vmul.f32 %v887_v10, %v878_v11  ;;  %v888_v14 = vmul.f32 %v887_v10, %v874_v12 }
 0x139   : > { %v894_v15 = vsub.f32 %v869_v0, %v890_v13  ;;  %v892_v16 = vsub.f32 %v867_v1, %v888_v14 }
 0x13b   : > { %v898_v17 = vmul.f32 %v894_v15, %v894_v15  ;;  %v896_v18 = vmul.f32 %v892_v16, %v892_v16 }
 0x13d   : > { %904 = vadd.xlane.f32.xlu0 %v898_v17  ;;  %900 = vadd.xlane.f32.xlu2 %v896_v18 }
 0x13e   : > { %v880_v19 = vpop.xlane.xlu1 %879  ;;  %v876_v20 = vpop.xlane.xlu0 %875 }
 0x13f   : > { %v891_v21 = vmul.f32 %v887_v10, %v880_v19  ;;  %v889_v22 = vmul.f32 %v887_v10, %v876_v20 }
 0x141   : > { %v4748_v23 = vsub.f32 %v870_v2, %v891_v21  ;;  %v4750_v24 = vsub.f32 %v868_v3, %v889_v22 }
 0x143   : > { %v899_v25 = vmul.f32 %v4748_v23, %v4748_v23  ;;  %v897_v26 = vmul.f32 %v4750_v24, %v4750_v24 }
 0x145   : > { %906 = vadd.xlane.f32.xlu1 %v899_v25  ;;  %902 = vadd.xlane.f32.xlu2 %v897_v26 }
 0x1b0   : > { %v901_v27 = vpop.xlane.xlu2 %900  ;;  %v905_v28 = vpop.xlane.xlu0 %904 }
 0x1b1   : > { %v908_v29 = vmul.f32 %v901_v27, %v887_v10  ;;  %v910_v30 = vmul.f32 %v905_v28, %v887_v10 }
 0x1b3   : > { %v912_v31 = vadd.f32 1e-12, %v908_v29  ;;  %v914_v32 = vadd.f32 1e-12, %v910_v30 }
 0x1b5   : > { %3853 = vrsqrt.f32 %v912_v31  ;;  %vm922_vm3 = vweird.f32 %v912_v31  ;;  %vm942_vm5 = vweird.f32 %v914_v32 }
 0x1b6   : > { %3855 = vrsqrt.f32 %v914_v32 }
 0x1b8   : > { %v907_v33 = vpop.xlane.xlu1 %906  ;;  %v903_v34 = vpop.xlane.xlu2 %902 }
 0x1b9   : > { %v911_v35 = vmul.f32 %v907_v33, %v887_v10  ;;  %v909_v36 = vmul.f32 %v903_v34, %v887_v10 }
 0x1bb   : > { %v3854_v37 = vpop.eup %3853  ;;  %v915_v38 = vadd.f32 1e-12, %v911_v35  ;;  %v913_v39 = vadd.f32 1e-12, %v909_v36 }
 0x1bc   : > { %v3856_v40 = vpop.eup %3855  ;;  %v917_v41 = vmul.f32 %v3854_v37, %v912_v31  ;;  %vm923_vm1 = vweird.f32 %v3854_v37 }
 0x1bd   : > { %v937_v42 = vmul.f32 %v3856_v40, %v914_v32  ;;  %3857 = vrsqrt.f32 %v915_v38  ;;  %vm943_vm2 = vweird.f32 %v3856_v40  ;;  %vm924_vm4 = vmor %vm922_vm3, %vm923_vm1  ;;  %vm952_vm9 = vweird.f32 %v915_v38 }
 0x1be   : > { %v918_v43 = vmul.f32 %v3854_v37, %v917_v41  ;;  %3859 = vrsqrt.f32 %v913_v39  ;;  %vm944_vm6 = vmor %vm942_vm5, %vm943_vm2  ;;  %vm932_vm11 = vweird.f32 %v913_v39 }
 0x1bf   : > { %v938_v44 = vmul.f32 %v3856_v40, %v937_v42 }
 0x1c0   : > { %v919_v45 = vmul.f32 0.5, %v918_v43 }
 0x1c1   : > { %v939_v46 = vmul.f32 0.5, %v938_v44 }
 0x1c2   : > { %v920_v47 = vsub.f32 1.5, %v919_v45 }
 0x1c3   : > { %v3858_v48 = vpop.eup %3857  ;;  %v940_v49 = vsub.f32 1.5, %v939_v46 }
 0x1c4   : > { %v3860_v50 = vpop.eup %3859  ;;  %v921_v51 = vmul.f32 %v3854_v37, %v920_v47  ;;  %v947_v52 = vmul.f32 %v3858_v48, %v915_v38  ;;  %vm953_vm7 = vweird.f32 %v3858_v48 }
 0x1c5   : > { %v941_v54 = vmul.f32 %v3856_v40, %v940_v49  ;;  %v927_v55 = vmul.f32 %v3860_v50, %v913_v39  ;;  %vm933_vm8 = vweird.f32 %v3860_v50  ;;  %vm954_vm10 = vmor %vm952_vm9, %vm953_vm7 }
 0x1c6   : > { %v925_v56 = vsel %vm924_vm4, %v3854_v37, %v921_v51  ;;  %v948_v57 = vmul.f32 %v3858_v48, %v947_v52  ;;  %vm934_vm12 = vmor %vm932_vm11, %vm933_vm8 }
 0x1c7   : > { %v956_v59 = vmul.f32 %v925_v56, %v892_v16  ;;  %v945_v60 = vsel %vm944_vm6, %v3856_v40, %v941_v54  ;;  %v928_v61 = vmul.f32 %v3860_v50, %v927_v55 }
 0x1c8   : > { %v958_v62 = vmul.f32 %v945_v60, %v894_v15  ;;  %v949_v63 = vmul.f32 0.5, %v948_v57 }
 0x1c9   : > { %v963_v0 = vmul.f32 %v3849_v53, %v956_v59  ;;  %v929_v1 = vmul.f32 0.5, %v928_v61 }
 0x1ca   : > { %v965_v2 = vmul.f32 %v3849_v53, %v958_v62  ;;  %v950_v3 = vsub.f32 1.5, %v949_v63 }
 0x1cb   : > { %v970_v4 = vadd.f32 %v3850_v58, %v963_v0  ;;  %v930_v5 = vsub.f32 1.5, %v929_v1 }
 0x1cc   : > { %v972_v6 = vadd.f32 %v3850_v58, %v965_v2  ;;  %v951_v7 = vmul.f32 %v3858_v48, %v950_v3 }
 0x1cd   : > { %974 = vst [vmem:[#allocation2 + $0x10] sm:$0xff] %v970_v4  ;;  %v931_v8 = vmul.f32 %v3860_v50, %v930_v5 }
 0x1ce   : > { %976 = vst [vmem:[#allocation2 + $0x18] sm:$0xff] %v972_v6  ;;  %v955_v9 = vsel %vm954_vm10, %v3858_v48, %v951_v7 }
 0x1cf   : > { %v959_v10 = vmul.f32 %v955_v9, %v4748_v23  ;;  %v935_v11 = vsel %vm934_vm12, %v3860_v50, %v931_v8 }
 0x1d0   : > { %v957_v12 = vmul.f32 %v935_v11, %v4750_v24 }
 0x1d1   : > { %v966_v13 = vmul.f32 %v3849_v53, %v959_v10 }
 0x1d2   : > { %v964_v14 = vmul.f32 %v3849_v53, %v957_v12 }
 0x1d3   : > { %v973_v15 = vadd.f32 %v3850_v58, %v966_v13 }
 0x1d4   : > { %v971_v16 = vadd.f32 %v3850_v58, %v964_v14 }
 0x1d5   : > { %977 = vst [vmem:[#allocation2 + $0x8] sm:$0xff] %v973_v15 }
 0x1d6   : > { %975 = vst [vmem:[#allocation2] sm:$0xff] %v971_v16 }
 0x1d7 PF: > { %v3675_v17 = vld [vmem:[%s4698_s9 + $0xac] sm:$0xf]  ;;  %v3422_v18 = vld [vmem:[%s4698_s9 + $0xb4] sm:$0xf0]  ;;  %v3420_v19 = vld [vmem:[%s4698_s9 + $0xa8] sm:$0xf] }
 0x1d8   : > { %v3425_v20 = vor.u32 %v3675_v17, %v3422_v18  ;;  %v3676_v21 = vld [vmem:[%s4698_s9 + $0xb0] sm:$0xf0]  ;;  %v3410_v23 = vld [vmem:[%s4698_s9 + $0x9c] sm:$0xf0]  ;;  %v3408_v25 = vld [vmem:[%s4698_s9 + $0x90] sm:$0xf] }
 0x1d9   : > { %v3672_v22 = vld [vmem:[%s4698_s9 + $0x94] sm:$0xf]  ;;  %v3421_v24 = vor.u32 %v3676_v21, %v3420_v19  ;;  %v3673_v26 = vld [vmem:[%s4698_s9 + $0x98] sm:$0xf0]  ;;  %v3398_v30 = vld [vmem:[%s4698_s9 + $0x84] sm:$0xf0] }
 0x1da   : > { %1175 = vmatpush.bf16.msra.mxu1 %v3425_v20  ;;  %v3413_v27 = vor.u32 %v3672_v22, %v3410_v23  ;;  %v3409_v28 = vor.u32 %v3673_v26, %v3408_v25  ;;  %v3669_v29 = vld [vmem:[%s4698_s9 + $0x7c] sm:$0xf]  ;;  %v3396_v31 = vld [vmem:[%s4698_s9 + $0x78] sm:$0xf]  ;;  %v3670_v32 = vld [vmem:[%s4698_s9 + $0x80] sm:$0xf0] }
 0x1db   : > { %1156 = vmatpush.bf16.msra.mxu0 %v3421_v24  ;;  %v3401_v33 = vor.u32 %v3669_v29, %v3398_v30  ;;  %v3397_v34 = vor.u32 %v3670_v32, %v3396_v31  ;;  %v3666_v35 = vld [vmem:[%s4698_s9 + $0x64] sm:$0xf]  ;;  %v3386_v36 = vld [vmem:[%s4698_s9 + $0x6c] sm:$0xf0]  ;;  %v3384_v37 = vld [vmem:[%s4698_s9 + $0x60] sm:$0xf] }
 0x1dc   : > { %v3667_v38 = vld [vmem:[%s4698_s9 + $0x68] sm:$0xf0]  ;;  %v3389_v40 = vor.u32 %v3666_v35, %v3386_v36  ;;  %v3374_v41 = vld [vmem:[%s4698_s9 + $0x54] sm:$0xf0]  ;;  %v3372_v42 = vld [vmem:[%s4698_s9 + $0x48] sm:$0xf] }
 0x1dd   : > { %v3663_v39 = vld [vmem:[%s4698_s9 + $0x4c] sm:$0xf]  ;;  %v3664_v43 = vld [vmem:[%s4698_s9 + $0x50] sm:$0xf0]  ;;  %v3385_v44 = vor.u32 %v3667_v38, %v3384_v37  ;;  %v3362_v48 = vld [vmem:[%s4698_s9 + $0x3c] sm:$0xf0] }
 0x1de   : > { %1176 = vmatpush.bf16.msra.mxu1 %v3413_v27  ;;  %v3377_v45 = vor.u32 %v3663_v39, %v3374_v41  ;;  %v3373_v46 = vor.u32 %v3664_v43, %v3372_v42  ;;  %v3660_v47 = vld [vmem:[%s4698_s9 + $0x34] sm:$0xf]  ;;  %v3360_v49 = vld [vmem:[%s4698_s9 + $0x30] sm:$0xf]  ;;  %v3661_v50 = vld [vmem:[%s4698_s9 + $0x38] sm:$0xf0] }
 0x1df   : > { %1157 = vmatpush.bf16.msra.mxu0 %v3409_v28  ;;  %v3365_v51 = vor.u32 %v3660_v47, %v3362_v48  ;;  %v3361_v52 = vor.u32 %v3661_v50, %v3360_v49  ;;  %v3657_v53 = vld [vmem:[%s4698_s9 + $0x1c] sm:$0xf]  ;;  %v3350_v54 = vld [vmem:[%s4698_s9 + $0x24] sm:$0xf0]  ;;  %v3348_v55 = vld [vmem:[%s4698_s9 + $0x18] sm:$0xf] }
 0x1e0   : > { %v3658_v56 = vld [vmem:[%s4698_s9 + $0x20] sm:$0xf0]  ;;  %v3353_v57 = vor.u32 %v3657_v53, %v3350_v54  ;;  %v3338_v60 = vld [vmem:[%s4698_s9 + $0xc] sm:$0xf0]  ;;  %v3336_v61 = vld [vmem:[%s4698_s9] sm:$0xf] }
 0x1e1   : > { %v3349_v58 = vor.u32 %v3658_v56, %v3348_v55  ;;  %v3654_v59 = vld [vmem:[%s4698_s9 + $0x4] sm:$0xf]  ;;  %v3655_v62 = vld [vmem:[%s4698_s9 + $0x8] sm:$0xf0]  ;;  %v979_v1 = vld [vmem:[#allocation2] sm:$0xff]  ;;  %vm1241_vm13 = vcmask 261120  }
 0x1e2   : > { %1177 = vmatpush.bf16.msra.mxu1 %v3401_v33  ;;  %v3341_v63 = vor.u32 %v3654_v59, %v3338_v60  ;;  %v978_v0 = vld [vmem:[#allocation2 + $0x10] sm:$0xff]  ;;  %v3337_v2 = vor.u32 %v3655_v62, %v3336_v61  ;;  %v980_v4 = vld [vmem:[#allocation2 + $0x18] sm:$0xff]  ;;  %v981_v5 = vld [vmem:[#allocation2 + $0x8] sm:$0xff]  ;;  %s4376_s2 = smov 96   ;;  %vm1346_vm14 = vcmask 64512   ;;  %s4377_s5 = smov 64  }
 0x1e3   : > { %1158 = vmatpush.bf16.msra.mxu0 %v3397_v34  ;;  %v4790_v3 = vpack.c.bf16 %v979_v1, %v978_v0  ;;  %v4794_v6 = vpack.c.bf16 %v981_v5, %v980_v4  ;;  %v4799_v7 = vld [vmem:[%s4737_s7] sm:$0x7]  ;;  %v4837_v26 = vld [vmem:[#allocation6] ss:$0 sm:$0xff]  ;;  %v4841_v30 = vld [vmem:[#allocation6 + $0x1] ss:$0 sm:$0xff] }
 0x1e4   : > { %v1023_v8 = vperm.slane %v4799_v7, 1  ;;  %v1022_v9 = vperm.slane %v4799_v7, 0  ;;  %v4845_v34 = vld [vmem:[#allocation6 + $0x2] ss:$0 sm:$0xff]  ;;  %v4849_v38 = vld [vmem:[#allocation6 + $0x3] ss:$0 sm:$0xff] }
 0x1e5   : > { %v3428_v39 = vld [vmem:[%s4698_s9 + $0xb0] sm:$0xf]  ;;  %v3416_v41 = vld [vmem:[%s4698_s9 + $0x98] sm:$0xf]  ;;  %v3674_v43 = vld [vmem:[%s4698_s9 + $0xa0] sm:$0xf0] }
 0x1e6   : > { %1178 = vmatpush.bf16.msra.mxu1 %v3389_v40  ;;  %v3677_v40 = vld [vmem:[%s4698_s9 + $0xb8] sm:$0xf0]  ;;  %v3404_v47 = vld [vmem:[%s4698_s9 + $0x80] sm:$0xf]  ;;  %v3671_v48 = vld [vmem:[%s4698_s9 + $0x88] sm:$0xf0] }
 0x1e7   : > { %1159 = vmatpush.bf16.msra.mxu0 %v3385_v44  ;;  %v3429_v42 = vor.u32 %v3677_v40, %v3428_v39  ;;  %v3405_v50 = vor.u32 %v3671_v48, %v3404_v47  ;;  %v3380_v54 = vld [vmem:[%s4698_s9 + $0x50] sm:$0xf]  ;;  %v3665_v55 = vld [vmem:[%s4698_s9 + $0x58] sm:$0xf0]  ;;  %v3356_v60 = vld [vmem:[%s4698_s9 + $0x20] sm:$0xf] }
 0x1e8   : > { %v3381_v56 = vor.u32 %v3665_v55, %v3380_v54  ;;  %v3659_v61 = vld [vmem:[%s4698_s9 + $0x28] sm:$0xf0]  ;;  %v3656_v0 = vld [vmem:[%s4698_s9 + $0x10] sm:$0xf0]  ;;  %s4378_s19 = smov 32   ;;  %s5362_s25 = sld [smem:[#allocation37_spill]] }
 0x1e9   : > { %1194 = vmatpush.bf16.msra.mxu2 %v3429_v42  ;;  %v3357_v62 = vor.u32 %v3659_v61, %v3356_v60 }
 0x1ea   : > { %1179 = vmatpush.bf16.msra.mxu1 %v3377_v45  ;;  %v3417_v45 = vor.u32 %v3674_v43, %v3416_v41 }
 0x1eb   : > { %1160 = vmatpush.bf16.msra.mxu0 %v3373_v46 }
 0x1ed   : > { %1195 = vmatpush.bf16.msra.mxu2 %v3417_v45 }
 0x1ee   : > { %1180 = vmatpush.bf16.msra.mxu1 %v3365_v51  ;;  %v3392_v51 = vld [vmem:[%s4698_s9 + $0x68] sm:$0xf]  ;;  %s5363_s22 = scalar_lea.vmem %s5362_s25, %s4709_s14 }
 0x1ef   : > { %1161 = vmatpush.bf16.msra.mxu0 %v3361_v52  ;;  %v3668_v52 = vld [vmem:[%s4698_s9 + $0x70] sm:$0xf0] }
 0x1f0   : > { %v3393_v53 = vor.u32 %v3668_v52, %v3392_v51 }
 0x1f1   : > { %1196 = vmatpush.bf16.msra.mxu2 %v3405_v50 }
 0x1f2   : > { %1181 = vmatpush.bf16.msra.mxu1 %v3353_v57  ;;  %v3368_v57 = vld [vmem:[%s4698_s9 + $0x38] sm:$0xf] }
 0x1f3   : > { %1162 = vmatpush.bf16.msra.mxu0 %v3349_v58  ;;  %v3662_v58 = vld [vmem:[%s4698_s9 + $0x40] sm:$0xf0] }
 0x1f4   : > { %v3369_v59 = vor.u32 %v3662_v58, %v3368_v57 }
 0x1f5   : > { %1197 = vmatpush.bf16.msra.mxu2 %v3393_v53 }
 0x1f6   : > { %1182 = vmatpush.bf16.msra.mxu1 %v3341_v63  ;;  %v3344_v63 = vld [vmem:[%s4698_s9 + $0x8] sm:$0xf] }
 0x1f7   : > { %1163 = vmatpush.bf16.msra.mxu0 %v3337_v2  ;;  %v3345_v1 = vor.u32 %v3656_v0, %v3344_v63 }
 0x1f9   : > { %1183 = vmatmul.bf16.vlgmr.msra.gmra.mxu1 %v4790_v3  ;;  %1198 = vmatpush.bf16.msra.mxu2 %v3381_v56 }
 0x1fa   : > { %1164 = vmatmul.bf16.vlgmr.msra.gmra.mxu0 %v4790_v3 }
 0x1fd   : > { %1199 = vmatpush.bf16.msra.mxu2 %v3369_v59 }
 0x201   : > { %1200 = vmatpush.bf16.msra.mxu2 %v3357_v62 }
 0x205   : > { %1201 = vmatpush.bf16.msra.mxu2 %v3345_v1 }
 0x208   : > { %1202 = vmatmul.bf16.vlgmr.msra.gmra.mxu2 %v4790_v3 }
 0x209   : > { %1188 = vmatmul.bf16.gmra.mxu1 %v4794_v6 }
 0x20a   : > { %1169 = vmatmul.bf16.gmra.mxu0 %v4794_v6 }
 0x218   : > { %1207 = vmatmul.bf16.gmra.mxu2 %v4794_v6 }
 0x276   : > { %v1184_v10 = vpop.f32.mrf.mxu1 }
 0x277   : > { %v4803_v11 = vadd.f32 %v1184_v10, %v1023_v8  ;;  %v1165_v12 = vpop.f32.mrf.mxu0 }
 0x278   : > { %v4805_v13 = vadd.f32 %v1165_v12, %v1022_v9 }
 0x279   : > { %3430 = vmatpush.xpose.msk.msrb.mxu0 %vm1241_vm13, %v4803_v11 }
 0x27c   : > { %3431 = vmatmul.msk.f32.vlgmr.msrb.gmra.mxu0 %vm1241_vm13, %v4805_v13 }
 0x27e   : > { %v1186_v14 = vpop.f32.mrf.mxu1 }
 0x27f   : > { %v4811_v15 = vadd.f32 %v1186_v14, %v1023_v8  ;;  %v1167_v16 = vpop.f32.mrf.mxu0 }
 0x280   : > { %v4815_v17 = vadd.f32 %v1167_v16, %v1022_v9 }
 0x281   : > { %3432 = vmatpush.xpose.msk.msra.mxu3 %vm1241_vm13, %v4811_v15 }
 0x284   : > { %3433 = vmatmul.msk.f32.vlgmr.msra.gmra.mxu3 %vm1241_vm13, %v4815_v17 }
 0x286   : > { %v1189_v18 = vpop.f32.mrf.mxu1 }
 0x287   : > { %v4819_v19 = vadd.f32 %v1189_v18, %v1023_v8  ;;  %v1170_v20 = vpop.f32.mrf.mxu0 }
 0x288   : > { %v4821_v21 = vadd.f32 %v1170_v20, %v1022_v9 }
 0x289   : > { %3434 = vmatpush.xpose.msk.msrb.mxu3 %vm1241_vm13, %v4819_v19 }
 0x28a   : > { %1541 = vrot.lane.b32.xlu2 %v4821_v21, %s4376_s2 }
 0x28c   : > { %3435 = vmatmul.msk.f32.vlgmr.msrb.gmra.mxu3 %vm1241_vm13, %v4821_v21 }
 0x28e   : > { %v1191_v22 = vpop.f32.mrf.mxu1 }
 0x28f   : > { %v4829_v23 = vadd.f32 %v1191_v22, %v1023_v8  ;;  %v1172_v24 = vpop.f32.mrf.mxu0 }
 0x290   : > { %v4833_v25 = vadd.f32 %v1172_v24, %v1022_v9 }
 0x291   : > { %3436 = vmatpush.xpose.msk.msra.mxu3 %vm1241_vm13, %v4829_v23 }
 0x294   : > { %3437 = vmatmul.msk.f32.vlgmr.msra.gmra.mxu3 %vm1241_vm13, %v4833_v25 }
 0x2f9   : > { %v1265_v27 = vpop.f32.mrf.mxu0 }
 0x2fa   : > { %v1266_v28 = vadd.f32 %v4837_v26, %v1265_v27 }
 0x2fc   : > { %v1347_v29 = vsel %vm1346_vm14, %v1266_v28, -inf }
 0x2fd   : > { %1348 = vmax.xlane.f32.xlu0 %v1347_v29 }
 0x307   : > { %v1291_v31 = vpop.f32.mrf.mxu3 }
 0x308   : > { %v1292_v32 = vadd.f32 %v4841_v30, %v1291_v31 }
 0x30a   : > { %v1350_v33 = vsel %vm1346_vm14, %v1292_v32, -inf }
 0x30b   : > { %1351 = vmax.xlane.f32.xlu0 %v1350_v33 }
 0x30f   : > { %v1317_v35 = vpop.f32.mrf.mxu3 }
 0x310   : > { %v1318_v36 = vadd.f32 %v4845_v34, %v1317_v35  ;;  %v1542_v35 = vpop.permute.xlu2 %1541 }
 0x312   : > { %v1353_v37 = vsel %vm1346_vm14, %v1318_v36, -inf }
 0x313   : > { %1354 = vmax.xlane.f32.xlu1 %v1353_v37  ;;  %v1203_v37 = vpop.f32.mrf.mxu2 }
 0x317   : > { %v1343_v44 = vpop.f32.mrf.mxu3 }
 0x318   : > { %v1344_v46 = vadd.f32 %v4849_v38, %v1343_v44 }
 0x31a   : > { %v1356_v49 = vsel %vm1346_vm14, %v1344_v46, -inf }
 0x31b   : > { %1357 = vmax.xlane.f32.xlu1 %v1356_v49  ;;  %v1205_v40 = vpop.f32.mrf.mxu2 }
 0x323   : > { %v1208_v43 = vpop.f32.mrf.mxu2 }
 0x32b   : > { %v1210_v47 = vpop.f32.mrf.mxu2 }
 0x334   : > { %1543 = vrot.lane.b32.xlu1 %v4819_v19, %s4376_s2 }
 0x370   : > { %v1349_v2 = vpop.xlane.xlu0 %1348 }
 0x371   : > { %v1359_v4 = vsub.f32 %v1266_v28, %v1349_v2 }
 0x373   : > { %v1363_v5 = vmul.f32 1.442695, %v1359_v4 }
 0x375   : > { %3881 = vpow2.f32 %v1363_v5 }
 0x37b   : > { %v3882_v8 = vpop.eup %3881 }
 0x37c   : > { %v1371_v9 = vsel %vm1346_vm14, %v3882_v8, 0.0 }
 0x37d   : > { %1372 = vadd.xlane.f32.xlu2 %v1371_v9 }
 0x37e   : > { %v1352_v10 = vpop.xlane.xlu0 %1351 }
 0x37f   : > { %v1360_v12 = vsub.f32 %v1292_v32, %v1352_v10 }
 0x381   : > { %v1365_v14 = vmul.f32 1.442695, %v1360_v12 }
 0x383   : > { %3883 = vpow2.f32 %v1365_v14 }
 0x386   : > { %v1355_v16 = vpop.xlane.xlu1 %1354 }
 0x387   : > { %v1361_v18 = vsub.f32 %v1318_v36, %v1355_v16  ;;  %v1024_v36 = vperm.slane %v4799_v7, 2 }
 0x389   : > { %v3884_v20 = vpop.eup %3883  ;;  %v1367_v22 = vmul.f32 1.442695, %v1361_v18  ;;  %v4884_v39 = vadd.f32 %v1203_v37, %v1024_v36  ;;  %v4887_v41 = vadd.f32 %v1205_v40, %v1024_v36  ;;  %v4894_v49 = vadd.f32 %v1210_v47, %v1024_v36 }
 0x38a   : > { %v1374_v3 = vsel %vm1346_vm14, %v3884_v20, 0.0 }
 0x38b   : > { %3885 = vpow2.f32 %v1367_v22  ;;  %1375 = vadd.xlane.f32.xlu2 %v1374_v3  ;;  %1409 = vmatpush.msrb.mxu3 %v4884_v39 }
 0x38d   : > { %1432 = vmatpush.msra.mxu3 %v4887_v41 }
 0x38e   : > { %v1358_v6 = vpop.xlane.xlu1 %1357 }
 0x38f   : > { %v1362_v24 = vsub.f32 %v1344_v46, %v1358_v6  ;;  %v4890_v46 = vadd.f32 %v1208_v43, %v1024_v36 }
 0x391   : > { %v3886_v27 = vpop.eup %3885  ;;  %v1369_v28 = vmul.f32 1.442695, %v1362_v24 }
 0x392   : > { %v1377_v29 = vsel %vm1346_vm14, %v3886_v27, 0.0 }
 0x393   : > { %3887 = vpow2.f32 %v1369_v28  ;;  %1378 = vadd.xlane.f32.xlu0 %v1377_v29 }
 0x399   : > { %v3888_v31 = vpop.eup %3887 }
 0x39a   : > { %v1380_v32 = vsel %vm1346_vm14, %v3888_v31, 0.0 }
 0x39b   : > { %1381 = vadd.xlane.f32.xlu0 %v1380_v32 }
 0x3a3   : > { %1569 = vrot.lane.b32.xlu2 %v4833_v25, %s4376_s2 }
 0x3a6   : > { %v1544_v33 = vpop.permute.xlu1 %1543 }
 0x3a7   : > { %3446 = vmatpush.xpose.msk.msrb.mxu2 %vm1241_vm13, %v1544_v33 }
 0x3aa   : > { %3447 = vmatmul.msk.f32.vlgmr.msrb.gmra.mxu2 %vm1241_vm13, %v1542_v35 }
 0x3af   : > { %1571 = vrot.lane.b32.xlu0 %v4829_v23, %s4376_s2 }
 0x3f0   : > { %v1373_v42 = vpop.xlane.xlu2 %1372 }
 0x3f1   : > { %3889 = vrcp.f32 %v1373_v42 }
 0x3f7   : > { %v3890_v44 = vpop.eup %3889 }
 0x3f8   : > { %v1387_v45 = vmul.f32 %v3890_v44, %v3882_v8 }
 0x3fa   : > { %3438 = vmatmul.msk.f32.vlgmr.msrb.gmra.mxu3 %vm1346_vm14, %v1387_v45 }
 0x3fb   : > { %1455 = vmatpush.msrb.mxu3 %v4890_v46 }
 0x3fe   : > { %v1376_v7 = vpop.xlane.xlu2 %1375 }
 0x3ff   : > { %3891 = vrcp.f32 %v1376_v7 }
 0x405   : > { %v3892_v48 = vpop.eup %3891 }
 0x406   : > { %v1388_v50 = vmul.f32 %v3892_v48, %v3884_v20  ;;  %v1379_v51 = vpop.xlane.xlu0 %1378  ;;  %v1570_v58 = vpop.permute.xlu2 %1569 }
 0x407   : > { %3893 = vrcp.f32 %v1379_v51 }
 0x408   : > { %3439 = vmatmul.msk.f32.vlgmr.msra.gmra.mxu3 %vm1346_vm14, %v1388_v50 }
 0x409   : > { %1478 = vmatpush.msra.mxu3 %v4894_v49 }
 0x40d   : > { %v3894_v52 = vpop.eup %3893 }
 0x40e   : > { %v1389_v53 = vmul.f32 %v3894_v52, %v3886_v27  ;;  %v1382_v54 = vpop.xlane.xlu0 %1381 }
 0x40f   : > { %3895 = vrcp.f32 %v1382_v54 }
 0x410   : > { %3440 = vmatmul.msk.f32.vlgmr.msrb.gmra.mxu3 %vm1346_vm14, %v1389_v53 }
 0x415   : > { %v3896_v55 = vpop.eup %3895 }
 0x416   : > { %v1390_v56 = vmul.f32 %v3896_v55, %v3888_v31 }
 0x418   : > { %3441 = vmatmul.msk.f32.vlgmr.msra.gmra.mxu3 %vm1346_vm14, %v1390_v56 }
 0x421   : > { %v1572_v57 = vpop.permute.xlu0 %1571 }
 0x422   : > { %3448 = vmatpush.xpose.msk.msrb.mxu3 %vm1241_vm13, %v1572_v57 }
 0x425   : > { %3449 = vmatmul.msk.f32.vlgmr.msrb.gmra.mxu3 %vm1241_vm13, %v1570_v58 }
 0x42d   : > { %v1566_v59 = vpop.f32.mrf.mxu2 }
 0x42e   : > { %v1567_v60 = vadd.f32 %v4845_v34, %v1566_v59 }
 0x430   : > { %v1603_v61 = vsel %vm1346_vm14, %v1567_v60, -inf }
 0x431   : > { %1604 = vmax.xlane.f32.xlu1 %v1603_v61 }
 0x44a   : > { %1515 = vrot.lane.b32.xlu1 %v4811_v15, %s4376_s2 }
 0x452   : > { %1827 = vrot.lane.b32.xlu1 %v4803_v11, %s4377_s5 }
 0x45a   : > { %1883 = vrot.lane.b32.xlu1 %v4819_v19, %s4377_s5 }
 0x462   : > { %1723 = vrot.lane.b32.xlu1 %v4894_v49, %s4376_s2 }
 0x46a   : > { %1853 = vrot.lane.b32.xlu1 %v4815_v17, %s4377_s5 }
 0x472   : > { %1909 = vrot.lane.b32.xlu1 %v4833_v25, %s4377_s5 }
 0x47d   : > { %v4916_v62 = vpop.f32.mrf.mxu3 }
 0x48b   : > { %v4918_v63 = vpop.f32.mrf.mxu3 }
 0x48c   : > { %v1483_v0 = vpack.c.bf16 %v4918_v63, %v4916_v62 }
 0x493   : > { %v4922_v1 = vpop.f32.mrf.mxu3 }
 0x49b   : > { %v4924_v2 = vpop.f32.mrf.mxu3 }
 0x49c   : > { %v1484_v4 = vpack.c.bf16 %v4924_v2, %v4922_v1 }
 0x4a4   : > { %v1605_v5 = vpop.xlane.xlu1 %1604 }
 0x4a5   : > { %v1611_v8 = vsub.f32 %v1567_v60, %v1605_v5 }
 0x4a7   : > { %v1617_v9 = vmul.f32 1.442695, %v1611_v8 }
 0x4a8   : > { %v1594_v10 = vpop.f32.mrf.mxu3 }
 0x4a9   : > { %3897 = vpow2.f32 %v1617_v9  ;;  %v1595_v12 = vadd.f32 %v4849_v38, %v1594_v10 }
 0x4ab   : > { %v1606_v14 = vsel %vm1346_vm14, %v1595_v12, -inf }
 0x4ac   : > { %1607 = vmax.xlane.f32.xlu2 %v1606_v14 }
 0x4af   : > { %v3898_v16 = vpop.eup %3897 }
 0x4b0   : > { %v1627_v18 = vsel %vm1346_vm14, %v3898_v16, 0.0 }
 0x4b1   : > { %1628 = vadd.xlane.f32.xlu0 %v1627_v18 }
 0x4bc   : > { %v1516_v20 = vpop.permute.xlu1 %1515 }
 0x4bd   : > { %3444 = vmatpush.xpose.msk.msrb.mxu1 %vm1241_vm13, %v1516_v20 }
 0x4c4   : > { %v1828_v22 = vpop.permute.xlu1 %1827  ;;  %1513 = vrot.lane.b32.xlu2 %v4815_v17, %s4376_s2 }
 0x4c5   : > { %1696 = vrot.lane.b32.xlu0 %v4890_v46, %s4376_s2 }
 0x4cc   : > { %v1884_v3 = vpop.permute.xlu1 %1883  ;;  %1825 = vrot.lane.b32.xlu2 %v4805_v13, %s4377_s5 }
 0x4d4   : > { %v1724_v6 = vpop.permute.xlu1 %1723  ;;  %1881 = vrot.lane.b32.xlu2 %v4821_v21, %s4377_s5 }
 0x4d5   : > { %1744 = vmatpush.msra.mxu3 %v1724_v6 }
 0x4dc   : > { %1855 = vrot.lane.b32.xlu2 %v4811_v15, %s4377_s5  ;;  %v1854_v52 = vpop.permute.xlu1 %1853 }
 0x4e4   : > { %1911 = vrot.lane.b32.xlu2 %v4829_v23, %s4377_s5  ;;  %v1910_v53 = vpop.permute.xlu1 %1909 }
 0x51f   : > { %v1608_v24 = vpop.xlane.xlu2 %1607 }
 0x520   : > { %v1612_v27 = vsub.f32 %v1595_v12, %v1608_v24  ;;  %v3861_v12 = vpack.i.bf16 %v4890_v46, %v4884_v39 }
 0x522   : > { %v1619_v28 = vmul.f32 1.442695, %v1612_v27 }
 0x524   : > { %3899 = vpow2.f32 %v1619_v28  ;;  %v1629_v32 = vpop.xlane.xlu0 %1628 }
 0x525   : > { %3901 = vrcp.f32 %v1629_v32 }
 0x527   : > { %v1514_v29 = vpop.permute.xlu2 %1513 }
 0x528   : > { %3445 = vmatmul.msk.f32.vlgmr.msrb.gmra.mxu1 %vm1241_vm13, %v1514_v29 }
 0x52a   : > { %v3900_v31 = vpop.eup %3899 }
 0x52b   : > { %v1630_v33 = vsel %vm1346_vm14, %v3900_v31, 0.0  ;;  %v3902_v36 = vpop.eup %3901 }
 0x52c   : > { %1631 = vadd.xlane.f32.xlu0 %v1630_v33  ;;  %v1639_v37 = vmul.f32 %v3902_v36, %v3898_v16 }
 0x52f   : > { %v1826_v35 = vpop.permute.xlu2 %1825 }
 0x537   : > { %v1882_v40 = vpop.permute.xlu2 %1881  ;;  %v1697_v42 = vpop.permute.xlu0 %1696 }
 0x538   : > { %1717 = vmatpush.msra.mxu2 %v1697_v42 }
 0x539   : > { %3452 = vmatmul.msk.f32.vlgmr.msra.gmra.mxu2 %vm1346_vm14, %v1639_v37 }
 0x53a   : > { %3474 = vmatpush.xpose.msk.msrb.mxu2 %vm1241_vm13, %v1828_v22 }
 0x53e   : > { %3478 = vmatpush.xpose.msk.msra.mxu2 %vm1241_vm13, %v1884_v3 }
 0x53f   : > { %v1856_v43 = vpop.permute.xlu2 %1855 }
 0x540   : > { %3476 = vmatpush.xpose.msk.msrb.mxu3 %vm1241_vm13, %v1856_v43 }
 0x541   : > { %3475 = vmatmul.msk.f32.vlgmr.msrb.gmra.mxu2 %vm1241_vm13, %v1826_v35 }
 0x547   : > { %v1912_v51 = vpop.permute.xlu2 %1911 }
 0x549   : > { %3479 = vmatmul.msk.f32.vlgmr.msra.gmra.mxu2 %vm1241_vm13, %v1882_v40 }
 0x59f   : > { %v1632_v44 = vpop.xlane.xlu0 %1631 }
 0x5a0   : > { %3903 = vrcp.f32 %v1632_v44  ;;  %v3679_v44 = vld [vmem:[%s4739_s28 + $0x8] sm:$0xff] }
 0x5a5   : > { %v1538_v45 = vpop.f32.mrf.mxu1 }
 0x5a6   : > { %v3904_v7 = vpop.eup %3903  ;;  %v1539_v47 = vadd.f32 %v4841_v30, %v1538_v45  ;;  %v3678_v45 = vld [vmem:[%s4739_s28] sm:$0xff] }
 0x5a7   : > { %v1640_v48 = vmul.f32 %v3904_v7, %v3900_v31 }
 0x5a8   : > { %v1600_v50 = vsel %vm1346_vm14, %v1539_v47, -inf }
 0x5a9   : > { %1601 = vmax.xlane.f32.xlu2 %v1600_v50  ;;  %3453 = vmatmul.msk.f32.vlgmr.msra.gmra.mxu3 %vm1346_vm14, %v1640_v48 }
 0x5aa   : > { %3480 = vmatpush.xpose.msk.msra.mxu3 %vm1241_vm13, %v1912_v51 }
 0x5b1   : > { %3477 = vmatmul.msk.f32.vlgmr.msrb.gmra.mxu3 %vm1241_vm13, %v1854_v52 }
 0x5b9   : > { %3481 = vmatmul.msk.f32.vlgmr.msra.gmra.mxu3 %vm1241_vm13, %v1910_v53 }
 0x5bc   : > { %v4958_v54 = vpop.f32.mrf.mxu2 }
 0x5c1   : > { %1669 = vrot.lane.b32.xlu2 %v4887_v41, %s4376_s2 }
 0x5c4   : > { %v1850_v55 = vpop.f32.mrf.mxu2 }
 0x5c5   : > { %v1851_v56 = vadd.f32 %v4837_v26, %v1850_v55 }
 0x5c7   : > { %v1937_v57 = vsel %vm1346_vm14, %v1851_v56, -inf }
 0x5c8   : > { %1938 = vmax.xlane.f32.xlu1 %v1937_v57 }
 0x5c9   : > { %1485 = vrot.lane.b32.xlu2 %v4805_v13, %s4376_s2 }
 0x5cc   : > { %v1906_v58 = vpop.f32.mrf.mxu2 }
 0x5cd   : > { %v1907_v59 = vadd.f32 %v4845_v34, %v1906_v58 }
 0x5cf   : > { %v1943_v60 = vsel %vm1346_vm14, %v1907_v59, -inf }
 0x5d0   : > { %1944 = vmax.xlane.f32.xlu0 %v1943_v60 }
 0x5d1   : > { %2158 = vrot.lane.b32.xlu2 %v4811_v15, %s4378_s19 }
 0x5d9   : > { %2130 = vrot.lane.b32.xlu2 %v4803_v11, %s4378_s19 }
 0x5e1   : > { %2007 = vrot.lane.b32.xlu2 %v4887_v41, %s4377_s5  ;;  %1487 = vrot.lane.b32.xlu1 %v4803_v11, %s4376_s2 }
 0x5e9   : > { %2128 = vrot.lane.b32.xlu2 %v4805_v13, %s4378_s19 }
 0x5f1   : > { %2059 = vrot.lane.b32.xlu2 %v4894_v49, %s4377_s5 }
 0x5f9   : > { %2214 = vrot.lane.b32.xlu2 %v4829_v23, %s4378_s19 }
 0x601   : > { %2184 = vrot.lane.b32.xlu2 %v4821_v21, %s4378_s19 }
 0x61c   : > { %v1602_v15 = vpop.xlane.xlu2 %1601 }
 0x61d   : > { %v1610_v61 = vsub.f32 %v1539_v47, %v1602_v15 }
 0x61f   : > { %v1615_v5 = vmul.f32 1.442695, %v1610_v61 }
 0x621   : > { %3905 = vpow2.f32 %v1615_v5 }
 0x624   : > { %v1670_v8 = vpop.permute.xlu2 %1669 }
 0x625   : > { %1690 = vmatpush.msra.mxu1 %v1670_v8 }
 0x627   : > { %v3906_v9 = vpop.eup %3905  ;;  %1812 = vmatpush.bf16.msrb.mxu1 %v3679_v44 }
 0x628   : > { %v1624_v11 = vsel %vm1346_vm14, %v3906_v9, 0.0 }
 0x629   : > { %1625 = vadd.xlane.f32.xlu0 %v1624_v11 }
 0x62b   : > { %1813 = vmatpush.bf16.msrb.mxu1 %v3678_v45 }
 0x62c   : > { %v1486_v13 = vpop.permute.xlu2 %1485  ;;  %v4992_v29 = vpop.f32.mrf.mxu3 }
 0x634   : > { %v4985_v10 = vpop.permute.xlu2 %2158  ;;  %v1878_v33 = vpop.f32.mrf.mxu3 }
 0x635   : > { %v1879_v36 = vadd.f32 %v4841_v30, %v1878_v33 }
 0x637   : > { %v1940_v37 = vsel %vm1346_vm14, %v1879_v36, -inf }
 0x63b   : > { %v1939_v14 = vpop.xlane.xlu1 %1938 }
 0x63c   : > { %v2131_v23 = vpop.permute.xlu2 %2130  ;;  %v1949_v22 = vsub.f32 %v1851_v56, %v1939_v14  ;;  %v1934_v40 = vpop.f32.mrf.mxu3 }
 0x63d   : > { %3862 = vrot.lane.b32.xlu0 %v3861_v12, %s4377_s5  ;;  %v1935_v42 = vadd.f32 %v4849_v38, %v1934_v40 }
 0x63e   : > { %v1953_v3 = vmul.f32 1.442695, %v1949_v22 }
 0x63f   : > { %v1946_v43 = vsel %vm1346_vm14, %v1935_v42, -inf }
 0x640   : > { %3907 = vpow2.f32 %v1953_v3 }
 0x643   : > { %v1945_v6 = vpop.xlane.xlu0 %1944 }
 0x644   : > { %v2008_v21 = vpop.permute.xlu2 %2007  ;;  %v1951_v24 = vsub.f32 %v1907_v59, %v1945_v6 }
 0x645   : > { %2028 = vmatpush.msrb.mxu3 %v2008_v21 }
 0x646   : > { %v1957_v27 = vmul.f32 1.442695, %v1951_v24  ;;  %v3908_v28 = vpop.eup %3907 }
 0x647   : > { %v1961_v31 = vsel %vm1346_vm14, %v3908_v28, 0.0 }
 0x648   : > { %3909 = vpow2.f32 %v1957_v27 }
 0x64c   : > { %v2129_v16 = vpop.permute.xlu2 %2128 }
 0x64e   : > { %v3910_v32 = vpop.eup %3909 }
 0x64f   : > { %v1967_v35 = vsel %vm1346_vm14, %v3910_v32, 0.0 }
 0x653   : > { %v1488_v18 = vpop.permute.xlu1 %1487 }
 0x654   : > { %v2060_v20 = vpop.permute.xlu2 %2059  ;;  %3442 = vmatpush.xpose.msk.msra.mxu0 %vm1241_vm13, %v1488_v18 }
 0x655   : > { %2080 = vmatpush.msra.mxu3 %v2060_v20 }
 0x657   : > { %3443 = vmatmul.msk.f32.vlgmr.msra.gmra.mxu0 %vm1241_vm13, %v1486_v13 }
 0x65c   : > { %v2215_v50 = vpop.permute.xlu2 %2214 }
 0x664   : > { %v2185_v14 = vpop.permute.xlu2 %2184 }
 0x667   : > { %1962 = vadd.xlane.f32.xlu0 %v1961_v31 }
 0x66f   : > { %1968 = vadd.xlane.f32.xlu0 %v1967_v35 }
 0x677   : > { %1941 = vmax.xlane.f32.xlu0 %v1940_v37 }
 0x67f   : > { %1947 = vmax.xlane.f32.xlu0 %v1946_v43 }
 0x693   : > { %2156 = vrot.lane.b32.xlu0 %v4815_v17, %s4378_s19 }
 0x69c   : > { %v1626_v7 = vpop.xlane.xlu0 %1625 }
 0x69d   : > { %3911 = vrcp.f32 %v1626_v7 }
 0x6a3   : > { %v3912_v47 = vpop.eup %3911 }
 0x6a4   : > { %v1638_v48 = vmul.f32 %v3912_v47, %v3906_v9 }
 0x6a6   : > { %3451 = vmatmul.msk.f32.vlgmr.msra.gmra.mxu1 %vm1346_vm14, %v1638_v48 }
 0x6a7   : > { %3496 = vmatpush.xpose.msk.msra.mxu1 %vm1241_vm13, %v2131_v23 }
 0x6ae   : > { %3472 = vmatmul.msk.bf16.vlgmr.msrb.gmra.mxu1 %vm1241_vm13, %v1483_v0 }
 0x6af   : > { %3502 = vmatpush.xpose.msk.msrb.mxu1 %vm1241_vm13, %v2215_v50  ;;  %v3863_v51 = vpop.permute.xlu0 %3862 }
 0x6b0   : > { %v3865_v52 = vunpack.i.h.bf16 %v3863_v51  ;;  %v3864_v53 = vunpack.i.l.bf16 %v3863_v51  ;;  %v3866_v51 = vpack.i.bf16 %v4887_v41, %v4884_v39 }
 0x6b2   : > { %2002 = vmatpush.msrb.mxu2 %v3864_v53 }
 0x6b4   : > { %2054 = vmatpush.msra.mxu2 %v3865_v52 }
 0x6be   : > { %3473 = vmatmul.msk.bf16.gmra.mxu1 %vm1241_vm13, %v1484_v4 }
 0x6ce   : > { %3497 = vmatmul.msk.f32.vlgmr.msra.gmra.mxu1 %vm1241_vm13, %v2129_v16 }
 0x6d4   : > { %v1510_v17 = vpop.f32.mrf.mxu0 }
 0x6d5   : > { %v1511_v55 = vadd.f32 %v4837_v26, %v1510_v17 }
 0x6d7   : > { %v1597_v62 = vsel %vm1346_vm14, %v1511_v55, -inf }
 0x6d8   : > { %1598 = vmax.xlane.f32.xlu2 %v1597_v62 }
 0x6da   : > { %v1963_v63 = vpop.xlane.xlu0 %1962 }
 0x6db   : > { %3913 = vrcp.f32 %v1963_v63 }
 0x6e1   : > { %v3914_v0 = vpop.eup %3913 }
 0x6e2   : > { %v1977_v56 = vmul.f32 %v3914_v0, %v3908_v28  ;;  %v1969_v57 = vpop.xlane.xlu0 %1968 }
 0x6e3   : > { %3915 = vrcp.f32 %v1969_v57 }
 0x6e4   : > { %3482 = vmatmul.msk.f32.vlgmr.msrb.gmra.mxu2 %vm1346_vm14, %v1977_v56 }
 0x6e5   : > { %3498 = vmatpush.xpose.msk.msrb.mxu2 %vm1241_vm13, %v4985_v10 }
 0x6e9   : > { %v3916_v1 = vpop.eup %3915 }
 0x6ea   : > { %v1979_v2 = vmul.f32 %v3916_v1, %v3910_v32  ;;  %v1942_v4 = vpop.xlane.xlu0 %1941 }
 0x6eb   : > { %v1950_v58 = vsub.f32 %v1879_v36, %v1942_v4 }
 0x6ec   : > { %3484 = vmatmul.msk.f32.vlgmr.msra.gmra.mxu2 %vm1346_vm14, %v1979_v2 }
 0x6ed   : > { %v1955_v59 = vmul.f32 1.442695, %v1950_v58 }
 0x6ef   : > { %3917 = vpow2.f32 %v1955_v59 }
 0x6f2   : > { %v1948_v60 = vpop.xlane.xlu0 %1947 }
 0x6f3   : > { %v1952_v15 = vsub.f32 %v1935_v42, %v1948_v60 }
 0x6f5   : > { %v3918_v61 = vpop.eup %3917  ;;  %v1959_v5 = vmul.f32 1.442695, %v1952_v15 }
 0x6f6   : > { %v1964_v8 = vsel %vm1346_vm14, %v3918_v61, 0.0 }
 0x6f7   : > { %3919 = vpow2.f32 %v1959_v5  ;;  %1965 = vadd.xlane.f32.xlu1 %v1964_v8 }
 0x6fd   : > { %v3920_v9 = vpop.eup %3919 }
 0x6fe   : > { %v1970_v11 = vsel %vm1346_vm14, %v3920_v9, 0.0 }
 0x6ff   : > { %1971 = vadd.xlane.f32.xlu0 %v1970_v11 }
 0x705   : > { %v2157_v13 = vpop.permute.xlu0 %2156 }
 0x706   : > { %3499 = vmatmul.msk.f32.vlgmr.msrb.gmra.mxu2 %vm1241_vm13, %v2157_v13 }
 0x710   : > { %2186 = vrot.lane.b32.xlu1 %v4819_v19, %s4378_s19 }
 0x713   : > { %2212 = vrot.lane.b32.xlu0 %v4833_v25, %s4378_s19 }
 0x723   : > { %v5029_v10 = vpop.f32.mrf.mxu1 }
 0x72b   : > { %v5031_v12 = vpop.f32.mrf.mxu1 }
 0x733   : > { %v5033_v23 = vpop.f32.mrf.mxu1 }
 0x73b   : > { %v5035_v21 = vpop.f32.mrf.mxu1 }
 0x743   : > { %v5037_v16 = vpop.f32.mrf.mxu1 }
 0x74b   : > { %v1599_v18 = vpop.xlane.xlu2 %1598  ;;  %v2153_v20 = vpop.f32.mrf.mxu1 }
 0x74c   : > { %v1609_v22 = vsub.f32 %v1511_v55, %v1599_v18  ;;  %v2154_v3 = vadd.f32 %v4837_v26, %v2153_v20 }
 0x74e   : > { %v1613_v19 = vmul.f32 1.442695, %v1609_v22  ;;  %v2240_v6 = vsel %vm1346_vm14, %v2154_v3, -inf }
 0x74f   : > { %2241 = vmax.xlane.f32.xlu1 %v2240_v6 }
 0x750   : > { %3921 = vpow2.f32 %v1613_v19 }
 0x756   : > { %v5041_v25 = vpop.eup %3921 }
 0x757   : > { %v1621_v24 = vsel %vm1346_vm14, %v5041_v25, 0.0 }
 0x758   : > { %1622 = vadd.xlane.f32.xlu1 %v1621_v24 }
 0x767   : > { %v5046_v26 = vpop.f32.mrf.mxu2 }
 0x76a   : > { %v1966_v27 = vpop.xlane.xlu1 %1965 }
 0x76b   : > { %3923 = vrcp.f32 %v1966_v27 }
 0x76f   : > { %v5049_v36 = vpop.f32.mrf.mxu2 }
 0x771   : > { %v3924_v28 = vpop.eup %3923 }
 0x772   : > { %v1978_v31 = vmul.f32 %v3924_v28, %v3918_v61  ;;  %v1972_v32 = vpop.xlane.xlu0 %1971  ;;  %v3681_v28 = vld [vmem:[%s4739_s28 + $0x18] sm:$0xff] }
 0x773   : > { %3925 = vrcp.f32 %v1972_v32  ;;  %v3684_v32 = vld [vmem:[%s4739_s28 + $0x30] sm:$0xff] }
 0x774   : > { %3483 = vmatmul.msk.f32.vlgmr.msrb.gmra.mxu3 %vm1346_vm14, %v1978_v31  ;;  %v3685_v31 = vld [vmem:[%s4739_s28 + $0x38] sm:$0xff] }
 0x779   : > { %v3926_v33 = vpop.eup %3925 }
 0x77a   : > { %v1980_v35 = vmul.f32 %v3926_v33, %v3920_v9 }
 0x77c   : > { %3485 = vmatmul.msk.f32.vlgmr.msra.gmra.mxu3 %vm1346_vm14, %v1980_v35  ;;  %v3683_v35 = vld [vmem:[%s4739_s28 + $0x28] sm:$0xff] }
 0x782   : > { %v2187_v37 = vpop.permute.xlu1 %2186 }
 0x783   : > { %3500 = vmatpush.xpose.msk.msrb.mxu3 %vm1241_vm13, %v2187_v37  ;;  %v3682_v37 = vld [vmem:[%s4739_s28 + $0x20] sm:$0xff] }
 0x785   : > { %v2213_v40 = vpop.permute.xlu0 %2212 }
 0x786   : > { %3501 = vmatmul.msk.f32.vlgmr.msrb.gmra.mxu3 %vm1241_vm13, %v2185_v14  ;;  %3503 = vmatmul.msk.f32.vlgmr.msrb.gmra.mxu1 %vm1241_vm13, %v2213_v40 }
 0x789   : > { %v2181_v42 = vpop.f32.mrf.mxu2 }
 0x78a   : > { %v2182_v43 = vadd.f32 %v4841_v30, %v2181_v42 }
 0x78c   : > { %v2243_v44 = vsel %vm1346_vm14, %v2182_v43, -inf }
 0x78d   : > { %2244 = vmax.xlane.f32.xlu0 %v2243_v44 }
 0x7c2   : > { %v2242_v45 = vpop.xlane.xlu1 %2241 }
 0x7c3   : > { %v2252_v7 = vsub.f32 %v2154_v3, %v2242_v45 }
 0x7c5   : > { %v2256_v47 = vmul.f32 1.442695, %v2252_v7 }
 0x7c7   : > { %3927 = vpow2.f32 %v2256_v47 }
 0x7cd   : > { %v3928_v48 = vpop.eup %3927 }
 0x7ce   : > { %v2264_v50 = vsel %vm1346_vm14, %v3928_v48, 0.0 }
 0x7cf   : > { %2265 = vadd.xlane.f32.xlu1 %v2264_v50 }
 0x7e8   : > { %3867 = vrot.lane.b32.xlu1 %v3866_v51, %s4378_s19 }
 0x7f7   : > { %v5060_v52 = vpop.f32.mrf.mxu3 }
 0x7ff   : > { %v5062_v30 = vpop.f32.mrf.mxu3 }
 0x800   : > { %v2245_v53 = vpop.xlane.xlu0 %2244 }
 0x801   : > { %v2253_v17 = vsub.f32 %v2182_v43, %v2245_v53  ;;  %v1750_v53 = vpack.c.bf16 %v4992_v29, %v4958_v54 }
 0x803   : > { %v2258_v55 = vmul.f32 1.442695, %v2253_v17  ;;  %v2237_v62 = vpop.f32.mrf.mxu1  ;;  %v2086_v17 = vpack.c.bf16 %v5062_v30, %v5049_v36  ;;  %v3875_v36 = vld [vmem:[%s5363_s22] ss:$0 sm:$0xff] }
 0x804   : > { %v2238_v63 = vadd.f32 %v4849_v38, %v2237_v62  ;;  %v1623_v38 = vpop.xlane.xlu1 %1622 }
 0x805   : > { %3929 = vpow2.f32 %v2258_v55 }
 0x806   : > { %v2249_v0 = vsel %vm1346_vm14, %v2238_v63, -inf }
 0x807   : > { %2250 = vmax.xlane.f32.xlu2 %v2249_v0 }
 0x809   : > { %v2209_v56 = vpop.f32.mrf.mxu3 }
 0x80a   : > { %v2210_v57 = vadd.f32 %v4845_v34, %v2209_v56 }
 0x80b   : > { %v3930_v41 = vpop.eup %3929 }
 0x80c   : > { %v2267_v1 = vsel %vm1346_vm14, %v3930_v41, 0.0  ;;  %v2246_v2 = vsel %vm1346_vm14, %v2210_v57, -inf }
 0x80d   : > { %2268 = vadd.xlane.f32.xlu0 %v2267_v1 }
 0x80f   : > { %2247 = vmax.xlane.f32.xlu2 %v2246_v2 }
 0x827   : > { %1642 = vrot.lane.b32.xlu2 %v4884_v39, %s4376_s2 }
 0x82f   : > { %2362 = vrot.lane.b32.xlu2 %v4894_v49, %s4378_s19 }
 0x842   : > { %v2266_v4 = vpop.xlane.xlu1 %2265 }
 0x843   : > { %3931 = vrcp.f32 %v2266_v4 }
 0x849   : > { %v3932_v58 = vpop.eup %3931 }
 0x84a   : > { %v2280_v15 = vmul.f32 %v3932_v58, %v3928_v48 }
 0x85a   : > { %v3868_v59 = vpop.permute.xlu1 %3867 }
 0x85b   : > { %v3870_v60 = vunpack.i.h.bf16 %v3868_v59  ;;  %v3869_v34 = vunpack.i.l.bf16 %v3868_v59 }
 0x85d   : > { %2305 = vmatpush.msra.mxu2 %v3869_v34  ;;  %2331 = vmatpush.msra.mxu3 %v3870_v60 }
 0x85e   : > { %3504 = vmatmul.msk.f32.vlgmr.msra.gmra.mxu2 %vm1346_vm14, %v2280_v15  ;;  %v3980_v15 = vld [vmem:[#allocation2] sm:$0xff] }
 0x85f   : > { %2414 = vmatpush.bf16.msrb.mxu3 %v3685_v31 }
 0x863   : > { %2415 = vmatpush.bf16.msrb.mxu3 %v3684_v32 }
 0x87a   : > { %v2251_v61 = vpop.xlane.xlu2 %2250 }
 0x87b   : > { %v2255_v5 = vsub.f32 %v2238_v63, %v2251_v61 }
 0x87d   : > { %v2262_v8 = vmul.f32 1.442695, %v2255_v5  ;;  %v4379_v5 = vmov 128.0  }
 0x87f   : > { %3933 = vpow2.f32 %v2262_v8 }
 0x880   : > { %3935 = vrcp.f32 %v1623_v38  ;;  %v2269_v39 = vpop.xlane.xlu0 %2268  ;;  %v3979_v38 = vld [vmem:[#allocation2 + $0x10] sm:$0xff] }
 0x881   : > { %3937 = vrcp.f32 %v2269_v39 }
 0x882   : > { %v2248_v49 = vpop.xlane.xlu2 %2247 }
 0x883   : > { %v2254_v9 = vsub.f32 %v2210_v57, %v2248_v49 }
 0x885   : > { %v3934_v11 = vpop.eup %3933  ;;  %v2260_v13 = vmul.f32 1.442695, %v2254_v9 }
 0x886   : > { %v3936_v14 = vpop.eup %3935  ;;  %v2273_v18 = vsel %vm1346_vm14, %v3934_v11, 0.0 }
 0x887   : > { %v3938_v20 = vpop.eup %3937  ;;  %3939 = vpow2.f32 %v2260_v13  ;;  %2274 = vadd.xlane.f32.xlu0 %v2273_v18  ;;  %v1637_v3 = vmul.f32 %v3936_v14, %v5041_v25  ;;  %v3680_v25 = vld [vmem:[%s4739_s28 + $0x10] sm:$0xff] }
 0x888   : > { %v2281_v22 = vmul.f32 %v3938_v20, %v3930_v41 }
 0x88a   : > { %v1643_v19 = vpop.permute.xlu2 %1642  ;;  %3505 = vmatmul.msk.f32.vlgmr.msra.gmra.mxu3 %vm1346_vm14, %v2281_v22 }
 0x88b   : > { %1663 = vmatpush.msrb.mxu0 %v1643_v19  ;;  %v3981_v19 = vld [vmem:[#allocation2 + $0x18] sm:$0xff] }
 0x88c   : > { %3450 = vmatmul.msk.f32.vlgmr.msrb.gmra.mxu0 %vm1346_vm14, %v1637_v3 }
 0x88d   : > { %v3940_v6 = vpop.eup %3939  ;;  %1775 = vmatpush.bf16.msra.mxu0 %v3681_v28 }
 0x88e   : > { %v2270_v24 = vsel %vm1346_vm14, %v3940_v6, 0.0 }
 0x88f   : > { %2271 = vadd.xlane.f32.xlu0 %v2270_v24 }
 0x891   : > { %1776 = vmatpush.bf16.msra.mxu0 %v3680_v25 }
 0x892   : > { %v2363_v27 = vpop.permute.xlu2 %2362 }
 0x893   : > { %2383 = vmatpush.msrb.mxu2 %v2363_v27 }
 0x895   : > { %2111 = vmatpush.bf16.msrb.mxu0 %v3683_v35  ;;  %v3982_v35 = vld [vmem:[#allocation2 + $0x8] sm:$0xff] }
 0x899   : > { %2112 = vmatpush.bf16.msrb.mxu0 %v3682_v37 }
 0x8a3   : > { %2336 = vrot.lane.b32.xlu0 %v4890_v46, %s4378_s19 }
 0x8e1   : > { %v2307_v45 = vpop.f32.mrf.mxu2 }
 0x8fa   : > { %v2275_v33 = vpop.xlane.xlu0 %2274 }
 0x8fb   : > { %3941 = vrcp.f32 %v2275_v33 }
 0x901   : > { %v3942_v40 = vpop.eup %3941 }
 0x902   : > { %v2283_v42 = vmul.f32 %v3942_v40, %v3934_v11  ;;  %v2272_v43 = vpop.xlane.xlu0 %2271 }
 0x903   : > { %3943 = vrcp.f32 %v2272_v43 }
 0x904   : > { %3507 = vmatmul.msk.f32.vlgmr.msrb.gmra.mxu2 %vm1346_vm14, %v2283_v42  ;;  %3945 = vrcp.f32 %v4379_v5 }
 0x909   : > { %v1665_v46 = vpop.f32.mrf.mxu0  ;;  %v3944_v48 = vpop.eup %3943 }
 0x90a   : > { %v1749_v44 = vpack.c.bf16 %v5029_v10, %v1665_v46  ;;  %v2282_v50 = vmul.f32 %v3944_v48, %v3940_v6  ;;  %v2085_v10 = vpack.c.bf16 %v5060_v52, %v5046_v26  ;;  %v3946_v8 = vpop.eup %3945 }
 0x90b   : > { %v2454_v39 = vmul.f32 128.0, %v3946_v8  ;;  %vm2458_vm15 = vweird.f32 %v3946_v8 }
 0x90c   : > { %3462 = vmatmul.msk.bf16.vlgmr.msra.gmra.mxu0 %vm1241_vm13, %v1749_v44 }
 0x90d   : > { %v2333_v7 = vpop.f32.mrf.mxu3  ;;  %v2455_v11 = vsub.f32 1.0, %v2454_v39  ;;  %v3691_v39 = vld [vmem:[%s4742_s18 + $0x24] sm:$0xf0] }
 0x90e   : > { %v2388_v47 = vpack.c.bf16 %v2333_v7, %v2307_v45  ;;  %v3576_v45 = vld [vmem:[%s4742_s18 + $0x70] sm:$0xf]  ;;  %v3701_v7 = vld [vmem:[%s4742_s18 + $0x74] sm:$0xf0] }
 0x90f   : > { %v2456_v18 = vmul.f32 %v3946_v8, %v2455_v11  ;;  %v3577_v48 = vor.u32 %v3701_v7, %v3576_v45  ;;  %v3538_v11 = vld [vmem:[%s4742_s18 + $0x28] sm:$0xf0] }
 0x910   : > { %3516 = vmatmul.msk.bf16.vlgmr.msrb.gmra.mxu3 %vm1241_vm13, %v2388_v47  ;;  %v3700_v47 = vld [vmem:[%s4742_s18 + $0x74] sm:$0xf] }
 0x911   : > { %v2457_v24 = vadd.f32 %v3946_v8, %v2456_v18  ;;  %2650 = vmatpush.bf16.msra.mxu0 %v3577_v48  ;;  %v3528_v18 = vld [vmem:[%s4742_s18 + $0x10] sm:$0xf] }
 0x913   : > { %v5111_v31 = vsel %vm2458_vm15, %v3946_v8, %v2457_v24  ;;  %v3536_v8 = vld [vmem:[%s4742_s18 + $0x20] sm:$0xf]  ;;  %v3687_v24 = vld [vmem:[%s4742_s18 + $0x4] sm:$0xf0] }
 0x915   : > { %v2337_v51 = vpop.permute.xlu0 %2336 }
 0x916   : > { %2357 = vmatpush.msra.mxu1 %v2337_v51 }
 0x917   : > { %3506 = vmatmul.msk.f32.vlgmr.msra.gmra.mxu1 %vm1346_vm14, %v2282_v50  ;;  %v3578_v50 = vld [vmem:[%s4742_s18 + $0x78] sm:$0xf0] }
 0x918   : > { %v3581_v51 = vor.u32 %v3700_v47, %v3578_v50 }
 0x91a   : > { %2669 = vmatpush.bf16.msrb.mxu1 %v3581_v51 }
 0x91c   : > { %3463 = vmatmul.msk.bf16.gmra.mxu0 %vm1241_vm13, %v1750_v53  ;;  %v3568_v53 = vld [vmem:[%s4742_s18 + $0x60] sm:$0xf] }
 0x92c   : > { %3494 = vmatmul.msk.bf16.vlgmr.msrb.gmra.mxu0 %vm1241_vm13, %v2085_v10  ;;  %v3699_v10 = vld [vmem:[%s4742_s18 + $0x64] sm:$0xf0] }
 0x93c   : > { %3495 = vmatmul.msk.bf16.gmra.mxu0 %vm1241_vm13, %v2086_v17  ;;  %v3698_v17 = vld [vmem:[%s4742_s18 + $0x64] sm:$0xf] }
 0x987   : > { %v2385_v63 = vpop.f32.mrf.mxu2 }
 0x989   : > { %v1778_v55 = vpop.f32.mrf.mxu0 }
 0x98a   : > { %v1816_v57 = vadd.f32 %v5031_v12, %v1778_v55  ;;  %v3569_v55 = vor.u32 %v3699_v10, %v3568_v53 }
 0x98c   : > { %2651 = vmatpush.bf16.msra.mxu0 %v3569_v55 }
 0x991   : > { %v1780_v62 = vpop.f32.mrf.mxu0 }
 0x992   : > { %v1818_v2 = vadd.f32 %v5033_v23, %v1780_v62  ;;  %v3570_v62 = vld [vmem:[%s4742_s18 + $0x68] sm:$0xf0] }
 0x993   : > { %v2417_v26 = vpop.f32.mrf.mxu3 }
 0x994   : > { %v2359_v0 = vpop.f32.mrf.mxu1 }
 0x995   : > { %v2389_v56 = vpack.c.bf16 %v2385_v63, %v2359_v0  ;;  %v3573_v63 = vor.u32 %v3698_v17, %v3570_v62  ;;  %v3560_v0 = vld [vmem:[%s4742_s18 + $0x50] sm:$0xf] }
 0x997   : > { %3517 = vmatmul.msk.bf16.gmra.mxu3 %vm1241_vm13, %v2389_v56  ;;  %2670 = vmatpush.bf16.msrb.mxu1 %v3573_v63  ;;  %v3697_v56 = vld [vmem:[%s4742_s18 + $0x54] sm:$0xf0] }
 0x999   : > { %v1783_v54 = vpop.f32.mrf.mxu0 }
 0x99a   : > { %v1821_v9 = vadd.f32 %v5035_v21, %v1783_v54  ;;  %v3696_v54 = vld [vmem:[%s4742_s18 + $0x54] sm:$0xf] }
 0x99b   : > { %v2419_v60 = vpop.f32.mrf.mxu3 }
 0x9a1   : > { %v1785_v29 = vpop.f32.mrf.mxu0 }
 0x9a2   : > { %v1823_v3 = vadd.f32 %v5037_v16, %v1785_v29  ;;  %v3561_v29 = vor.u32 %v3697_v56, %v3560_v0 }
 0x9a4   : > { %2652 = vmatpush.bf16.msra.mxu0 %v3561_v29 }
 0x9a9   : > { %v2114_v52 = vpop.f32.mrf.mxu0 }
 0x9aa   : > { %v2124_v41 = vadd.f32 %v2114_v52, %v1816_v57  ;;  %v3562_v57 = vld [vmem:[%s4742_s18 + $0x58] sm:$0xf0]  ;;  %v3552_v52 = vld [vmem:[%s4742_s18 + $0x40] sm:$0xf] }
 0x9ac   : > { %v2427_v30 = vadd.f32 %v2417_v26, %v2124_v41  ;;  %v3565_v26 = vor.u32 %v3696_v54, %v3562_v57  ;;  %v3695_v41 = vld [vmem:[%s4742_s18 + $0x44] sm:$0xf0]  ;;  %v3876_v54 = vld [vmem:[%s735_s13] ss:$0 sm:$0xff] }
 0x9ae   : > { %v2435_v1 = vadd.f32 %v3875_v36, %v2427_v30  ;;  %2671 = vmatpush.bf16.msrb.mxu1 %v3565_v26  ;;  %v3553_v30 = vor.u32 %v3695_v41, %v3552_v52  ;;  %v3877_v41 = vld [vmem:[%s848_s23] ss:$0 sm:$0xff] }
 0x9b0   : > { %v2439_v4 = vadd.f32 %v3979_v38, %v2435_v1  ;;  %v3554_v1 = vld [vmem:[%s4742_s18 + $0x48] sm:$0xf0]  ;;  %2653 = vmatpush.bf16.msra.mxu0 %v3553_v30 }
 0x9b1   : > { %v2116_v58 = vpop.f32.mrf.mxu0 }
 0x9b2   : > { %v2125_v59 = vadd.f32 %v2116_v58, %v1818_v2  ;;  %2445 = vadd.xlane.f32.xlu2 %v2439_v4  ;;  %v3544_v58 = vld [vmem:[%s4742_s18 + $0x30] sm:$0xf] }
 0x9b4   : > { %v2428_v34 = vadd.f32 %v2419_v60, %v2125_v59  ;;  %v3693_v59 = vld [vmem:[%s4742_s18 + $0x34] sm:$0xf0]  ;;  %v3692_v60 = vld [vmem:[%s4742_s18 + $0x34] sm:$0xf] }
 0x9b6   : > { %v2436_v12 = vadd.f32 %v3875_v36, %v2428_v34  ;;  %v3545_v34 = vor.u32 %v3693_v59, %v3544_v58 }
 0x9b8   : > { %v2440_v61 = vadd.f32 %v3980_v15, %v2436_v12  ;;  %v3546_v12 = vld [vmem:[%s4742_s18 + $0x38] sm:$0xf0]  ;;  %2654 = vmatpush.bf16.msra.mxu0 %v3545_v34 }
 0x9b9   : > { %v2119_v49 = vpop.f32.mrf.mxu0 }
 0x9ba   : > { %2447 = vadd.xlane.f32.xlu1 %v2440_v61  ;;  %v2126_v23 = vadd.f32 %v2119_v49, %v1821_v9  ;;  %v3690_v49 = vld [vmem:[%s4742_s18 + $0x24] sm:$0xf]  ;;  %v3537_v9 = vor.u32 %v3691_v39, %v3536_v8 }
 0x9bc   : > { %2655 = vmatpush.bf16.msra.mxu0 %v3537_v9 }
 0x9c1   : > { %v2121_v22 = vpop.f32.mrf.mxu0 }
 0x9c2   : > { %v2127_v27 = vadd.f32 %v2121_v22, %v1823_v3  ;;  %v3688_v22 = vld [vmem:[%s4742_s18 + $0x14] sm:$0xf] }
 0xa1a   : > { %v2422_v13 = vpop.f32.mrf.mxu3 }
 0xa1b   : > { %v2429_v14 = vadd.f32 %v2422_v13, %v2126_v23  ;;  %v3541_v23 = vor.u32 %v3690_v49, %v3538_v11  ;;  %v3709_v11 = vld [vmem:[%s4744_s16 + $0x38] sm:$0xff] }
 0xa1c   : > { %2896 = vmatpush.bf16.msra.mxu2 %v3709_v11 }
 0xa1d   : > { %v2437_v20 = vadd.f32 %v3875_v36, %v2429_v14 }
 0xa1f   : > { %v2441_v6 = vadd.f32 %v3981_v19, %v2437_v20  ;;  %v3689_v20 = vld [vmem:[%s4742_s18 + $0x14] sm:$0xf0]  ;;  %v3530_v19 = vld [vmem:[%s4742_s18 + $0x18] sm:$0xf0] }
 0xa20   : > { %v3529_v3 = vor.u32 %v3689_v20, %v3528_v18 }
 0xa21   : > { %2449 = vadd.xlane.f32.xlu0 %v2441_v6 }
 0xa22   : > { %v2424_v28 = vpop.f32.mrf.mxu3  ;;  %2656 = vmatpush.bf16.msra.mxu0 %v3529_v3  ;;  %v3716_v3 = vld [vmem:[%s4744_s16 + $0x70] sm:$0xff] }
 0xa23   : > { %v2430_v25 = vadd.f32 %v2424_v28, %v2127_v27 }
 0xa25   : > { %v2438_v21 = vadd.f32 %v3875_v36, %v2430_v25  ;;  %v2446_v32 = vpop.xlane.xlu2 %2445  ;;  %v3694_v36 = vld [vmem:[%s4742_s18 + $0x44] sm:$0xf]  ;;  %v3533_v25 = vor.u32 %v3688_v22, %v3530_v19  ;;  %v3708_v22 = vld [vmem:[%s4744_s16 + $0x30] sm:$0xff] }
 0xa26   : > { %v2460_v33 = vmul.f32 %v5111_v31, %v2446_v32  ;;  %v3557_v2 = vor.u32 %v3694_v36, %v3554_v1  ;;  %v3522_v32 = vld [vmem:[%s4742_s18 + $0x8] sm:$0xf0]  ;;  %2897 = vmatpush.bf16.msra.mxu2 %v3708_v22 }
 0xa27   : > { %v5114_v16 = vadd.f32 %v3982_v35, %v2438_v21  ;;  %v3686_v21 = vld [vmem:[%s4742_s18 + $0x4] sm:$0xf] }
 0xa28   : > { %v5116_v37 = vsub.f32 %v2439_v4, %v2460_v33  ;;  %2672 = vmatpush.bf16.msrb.mxu1 %v3557_v2 }
 0xa29   : > { %2451 = vadd.xlane.f32.xlu2 %v5114_v16 }
 0xa2a   : > { %v2468_v40 = vmul.f32 %v5116_v37, %v5116_v37 }
 0xa2c   : > { %2472 = vadd.xlane.f32.xlu1 %v2468_v40 }
 0xa2d   : > { %v2448_v42 = vpop.xlane.xlu1 %2447 }
 0xa2e   : > { %v2461_v43 = vmul.f32 %v5111_v31, %v2448_v42  ;;  %v3525_v42 = vor.u32 %v3686_v21, %v3522_v32  ;;  %v3715_v21 = vld [vmem:[%s4744_s16 + $0x68] sm:$0xff] }
 0xa30   : > { %v5122_v46 = vsub.f32 %v2440_v61, %v2461_v43  ;;  %v3549_v61 = vor.u32 %v3692_v60, %v3546_v12 }
 0xa32   : > { %v2469_v44 = vmul.f32 %v5122_v46, %v5122_v46  ;;  %2673 = vmatpush.bf16.msrb.mxu1 %v3549_v61 }
 0xa34   : > { %2474 = vadd.xlane.f32.xlu2 %v2469_v44 }
 0xa36   : > { %2674 = vmatpush.bf16.msrb.mxu1 %v3541_v23  ;;  %v3717_v23 = vld [vmem:[%s4744_s16 + $0x78] sm:$0xff] }
 0xa37   : > { %2915 = vmatpush.bf16.msra.mxu3 %v3717_v23 }
 0xa3a   : > { %2675 = vmatpush.bf16.msrb.mxu1 %v3533_v25  ;;  %v3707_v25 = vld [vmem:[%s4744_s16 + $0x28] sm:$0xff] }
 0xa3b   : > { %2916 = vmatpush.bf16.msra.mxu3 %v3716_v3  ;;  %2898 = vmatpush.bf16.msra.mxu2 %v3707_v25 }
 0xa3e   : > { %2676 = vmatpush.bf16.msrb.mxu1 %v3525_v42  ;;  %v3705_v42 = vld [vmem:[%s4744_s16 + $0x18] sm:$0xff] }
 0xa3f   : > { %2917 = vmatpush.bf16.msra.mxu3 %v3715_v21 }
 0xa94   : > { %v2450_v38 = vpop.xlane.xlu0 %2449 }
 0xa95   : > { %v2462_v4 = vmul.f32 %v5111_v31, %v2450_v38 }
 0xa97   : > { %v5147_v15 = vsub.f32 %v2441_v6, %v2462_v4  ;;  %v3520_v6 = vld [vmem:[%s4742_s18] sm:$0xf] }
 0xa98   : > { %v3521_v35 = vor.u32 %v3687_v24, %v3520_v6 }
 0xa99   : > { %v2470_v5 = vmul.f32 %v5147_v15, %v5147_v15 }
 0xa9a   : > { %2657 = vmatpush.bf16.msra.mxu0 %v3521_v35  ;;  %v3706_v35 = vld [vmem:[%s4744_s16 + $0x20] sm:$0xff] }
 0xa9b   : > { %2476 = vadd.xlane.f32.xlu1 %v2470_v5  ;;  %2899 = vmatpush.bf16.msra.mxu2 %v3706_v35 }
 0xa9c   : > { %v2452_v13 = vpop.xlane.xlu2 %2451 }
 0xa9d   : > { %v2463_v14 = vmul.f32 %v5111_v31, %v2452_v13 }
 0xa9f   : > { %v5163_v27 = vsub.f32 %v5114_v16, %v2463_v14  ;;  %v2473_v28 = vpop.xlane.xlu1 %2472  ;;  %2900 = vmatpush.bf16.msra.mxu2 %v3705_v42 }
 0xaa0   : > { %v2480_v33 = vmul.f32 %v2473_v28, %v5111_v31 }
 0xaa1   : > { %v2471_v40 = vmul.f32 %v5163_v27, %v5163_v27 }
 0xaa2   : > { %v2484_v43 = vadd.f32 1e-12, %v2480_v33 }
 0xaa3   : > { %2478 = vadd.xlane.f32.xlu2 %v2471_v40  ;;  %v3714_v40 = vld [vmem:[%s4744_s16 + $0x60] sm:$0xff] }
 0xaa4   : > { %3947 = vrsqrt.f32 %v2484_v43  ;;  %vm2494_vm1 = vweird.f32 %v2484_v43  ;;  %2918 = vmatpush.bf16.msra.mxu3 %v3714_v40 }
 0xaa7   : > { %v2475_v16 = vpop.xlane.xlu2 %2474 }
 0xaa8   : > { %v2481_v44 = vmul.f32 %v2475_v16, %v5111_v31  ;;  %v3704_v16 = vld [vmem:[%s4744_s16 + $0x10] sm:$0xff] }
 0xaa9   : > { %2901 = vmatpush.bf16.msra.mxu2 %v3704_v16 }
 0xaaa   : > { %v3948_v45 = vpop.eup %3947  ;;  %v2485_v7 = vadd.f32 1e-12, %v2481_v44  ;;  %v3712_v44 = vld [vmem:[%s4744_s16 + $0x50] sm:$0xff] }
 0xaab   : > { %v2489_v47 = vmul.f32 %v3948_v45, %v2484_v43  ;;  %vm2495_vm0 = vweird.f32 %v3948_v45  ;;  %v3713_v43 = vld [vmem:[%s4744_s16 + $0x58] sm:$0xff] }
 0xaac   : > { %3949 = vrsqrt.f32 %v2485_v7  ;;  %vm2496_vm2 = vmor %vm2494_vm1, %vm2495_vm0  ;;  %vm2504_vm4 = vweird.f32 %v2485_v7  ;;  %2919 = vmatpush.bf16.msra.mxu3 %v3713_v43 }
 0xaad   : > { %v2490_v48 = vmul.f32 %v3948_v45, %v2489_v47  ;;  %v2564_v47 = vld [vmem:[%s4727_s1] sm:$0x3] }
 0xaaf   : > { %v2491_v50 = vmul.f32 0.5, %v2490_v48  ;;  %v3702_v48 = vld [vmem:[%s4744_s16] sm:$0xff] }
 0xab0   : > { %2920 = vmatpush.bf16.msra.mxu3 %v3712_v44 }
 0xab1   : > { %v2492_v51 = vsub.f32 1.5, %v2491_v50  ;;  %v3710_v50 = vld [vmem:[%s4744_s16 + $0x40] sm:$0xff] }
 0xab2   : > { %v3950_v53 = vpop.eup %3949 }
 0xab3   : > { %v2493_v10 = vmul.f32 %v3948_v45, %v2492_v51  ;;  %v2499_v17 = vmul.f32 %v3950_v53, %v2485_v7  ;;  %vm2505_vm3 = vweird.f32 %v3950_v53  ;;  %v3711_v7 = vld [vmem:[%s4744_s16 + $0x48] sm:$0xff]  ;;  %v5213_v51 = vperm.slane %v2564_v47, 0 }
 0xab4   : > { %vm2506_vm5 = vmor %vm2504_vm4, %vm2505_vm3  ;;  %2921 = vmatpush.bf16.msra.mxu3 %v3711_v7 }
 0xab5   : > { %v2500_v55 = vmul.f32 %v3950_v53, %v2499_v17  ;;  %v2497_v62 = vsel %vm2496_vm2, %v3948_v45, %v2493_v10  ;;  %v3703_v45 = vld [vmem:[%s4744_s16 + $0x8] sm:$0xff] }
 0xab6   : > { %v2528_v56 = vmul.f32 %v2497_v62, %v5116_v37  ;;  %2902 = vmatpush.bf16.msra.mxu2 %v3703_v45 }
 0xab7   : > { %v2501_v63 = vmul.f32 0.5, %v2500_v55 }
 0xab8   : > { %v2535_v52 = vmul.f32 %v3876_v54, %v2528_v56  ;;  %2922 = vmatpush.bf16.msra.mxu3 %v3710_v50 }
 0xab9   : > { %v2502_v0 = vsub.f32 1.5, %v2501_v63 }
 0xaba   : > { %v5180_v30 = vadd.f32 %v3877_v41, %v2535_v52  ;;  %2903 = vmatpush.bf16.msra.mxu2 %v3702_v48 }
 0xabb   : > { %v2503_v29 = vmul.f32 %v3950_v53, %v2502_v0 }
 0xabd   : > { %v2507_v57 = vsel %vm2506_vm5, %v3950_v53, %v2503_v29  ;;  %v5215_v53 = vperm.slane %v2564_v47, 1 }
 0xabe   : > { %v2529_v26 = vmul.f32 %v2507_v57, %v5122_v46 }
 0xac0   : > { %v2536_v36 = vmul.f32 %v3876_v54, %v2529_v26 }
 0xac2   : > { %v5182_v1 = vadd.f32 %v3877_v41, %v2536_v36 }
 0xac4   : > { %v2546_v37 = vpack.c.bf16 %v5182_v1, %v5180_v30 }
 0xac6   : > { %2658 = vmatmul.bf16.vlgmr.msra.gmra.mxu0 %v2546_v37  ;;  %2677 = vmatmul.bf16.vlgmr.msrb.gmra.mxu1 %v2546_v37 }
 0xb0e   : > { %v2477_v2 = vpop.xlane.xlu1 %2476 }
 0xb0f   : > { %v2482_v38 = vmul.f32 %v2477_v2, %v5111_v31 }
 0xb11   : > { %v2486_v46 = vadd.f32 1e-12, %v2482_v38 }
 0xb13   : > { %3951 = vrsqrt.f32 %v2486_v46  ;;  %vm2514_vm7 = vweird.f32 %v2486_v46 }
 0xb16   : > { %v2479_v4 = vpop.xlane.xlu2 %2478 }
 0xb17   : > { %v2483_v58 = vmul.f32 %v2479_v4, %v5111_v31 }
 0xb19   : > { %v3952_v59 = vpop.eup %3951  ;;  %v2487_v60 = vadd.f32 1e-12, %v2483_v58 }
 0xb1a   : > { %v2509_v34 = vmul.f32 %v3952_v59, %v2486_v46  ;;  %vm2515_vm6 = vweird.f32 %v3952_v59 }
 0xb1b   : > { %3953 = vrsqrt.f32 %v2487_v60  ;;  %vm2516_vm8 = vmor %vm2514_vm7, %vm2515_vm6  ;;  %vm2524_vm10 = vweird.f32 %v2487_v60 }
 0xb1c   : > { %v2510_v12 = vmul.f32 %v3952_v59, %v2509_v34 }
 0xb1e   : > { %v2511_v61 = vmul.f32 0.5, %v2510_v12 }
 0xb20   : > { %v2512_v5 = vsub.f32 1.5, %v2511_v61 }
 0xb21   : > { %v3954_v8 = vpop.eup %3953 }
 0xb22   : > { %v2513_v39 = vmul.f32 %v3952_v59, %v2512_v5  ;;  %v2519_v49 = vmul.f32 %v3954_v8, %v2487_v60  ;;  %vm2525_vm9 = vweird.f32 %v3954_v8 }
 0xb23   : > { %vm2526_vm11 = vmor %vm2524_vm10, %vm2525_vm9 }
 0xb24   : > { %v2520_v9 = vmul.f32 %v3954_v8, %v2519_v49  ;;  %v2517_v14 = vsel %vm2516_vm8, %v3952_v59, %v2513_v39 }
 0xb25   : > { %v2530_v20 = vmul.f32 %v2517_v14, %v5147_v15 }
 0xb26   : > { %v2521_v13 = vmul.f32 0.5, %v2520_v9 }
 0xb27   : > { %v2537_v28 = vmul.f32 %v3876_v54, %v2530_v20 }
 0xb28   : > { %v2522_v18 = vsub.f32 1.5, %v2521_v13 }
 0xb29   : > { %v5196_v15 = vadd.f32 %v3877_v41, %v2537_v28 }
 0xb2a   : > { %v2523_v19 = vmul.f32 %v3954_v8, %v2522_v18 }
 0xb2c   : > { %v2527_v6 = vsel %vm2526_vm11, %v3954_v8, %v2523_v19 }
 0xb2d   : > { %v2531_v24 = vmul.f32 %v2527_v6, %v5163_v27 }
 0xb2f   : > { %v2538_v32 = vmul.f32 %v3876_v54, %v2531_v24 }
 0xb31   : > { %v5198_v33 = vadd.f32 %v3877_v41, %v2538_v32 }
 0xb33   : > { %v2547_v27 = vpack.c.bf16 %v5198_v33, %v5196_v15 }
 0xb35   : > { %2663 = vmatmul.bf16.gmra.mxu0 %v2547_v27  ;;  %2682 = vmatmul.bf16.gmra.mxu1 %v2547_v27 }
 0xb43   : > { %v2659_v10 = vpop.f32.mrf.mxu0  ;;  %v2678_v17 = vpop.f32.mrf.mxu1 }
 0xb44   : > { %v2660_v55 = vadd.f32 %v2659_v10, %v5213_v51  ;;  %v2679_v62 = vadd.f32 %v2678_v17, %v5215_v53 }
 0xb46   : > { %v2696_v63 = vmul.f32 0.044715, %v2660_v55  ;;  %v2697_v0 = vmul.f32 0.044715, %v2679_v62  ;;  %v2688_v18 = vmul.f32 0.5, %v2660_v55  ;;  %v2689_v3 = vmul.f32 0.5, %v2679_v62 }
 0xb48   : > { %v2704_v56 = vmul.f32 %v2696_v63, %v2660_v55  ;;  %v2705_v54 = vmul.f32 %v2697_v0, %v2679_v62 }
 0xb4a   : > { %v2712_v29 = vmul.f32 %v2704_v56, %v2660_v55  ;;  %v2713_v57 = vmul.f32 %v2705_v54, %v2679_v62 }
 0xb4b   : > { %v2661_v26 = vpop.f32.mrf.mxu0  ;;  %v2680_v52 = vpop.f32.mrf.mxu1 }
 0xb4c   : > { %v2720_v41 = vadd.f32 %v2712_v29, %v2660_v55  ;;  %v2662_v36 = vadd.f32 %v2661_v26, %v5213_v51  ;;  %v2681_v37 = vadd.f32 %v2680_v52, %v5215_v53  ;;  %v2721_v2 = vadd.f32 %v2713_v57, %v2679_v62 }
 0xb4e   : > { %v2698_v38 = vmul.f32 0.044715, %v2662_v36  ;;  %v2699_v46 = vmul.f32 0.044715, %v2681_v37  ;;  %v2728_v4 = vmul.f32 0.7978846, %v2720_v41 }
 0xb4f   : > { %v2729_v59 = vmul.f32 0.7978846, %v2721_v2  ;;  %v2690_v20 = vmul.f32 0.5, %v2662_v36  ;;  %v2691_v19 = vmul.f32 0.5, %v2681_v37 }
 0xb50   : > { %v2706_v58 = vmul.f32 %v2698_v38, %v2662_v36  ;;  %v2707_v60 = vmul.f32 %v2699_v46, %v2681_v37  ;;  %3955 = vtanh.f32 %v2728_v4 }
 0xb51   : > { %3957 = vtanh.f32 %v2729_v59 }
 0xb52   : > { %v2714_v34 = vmul.f32 %v2706_v58, %v2662_v36  ;;  %v2715_v12 = vmul.f32 %v2707_v60, %v2681_v37 }
 0xb54   : > { %v2722_v61 = vadd.f32 %v2714_v34, %v2662_v36  ;;  %v2723_v5 = vadd.f32 %v2715_v12, %v2681_v37 }
 0xb56   : > { %v2730_v8 = vmul.f32 0.7978846, %v2722_v61  ;;  %v2731_v39 = vmul.f32 0.7978846, %v2723_v5  ;;  %v3956_v49 = vpop.eup %3955 }
 0xb57   : > { %v3958_v9 = vpop.eup %3957  ;;  %v2744_v11 = vadd.f32 1.0, %v3956_v49 }
 0xb58   : > { %3959 = vtanh.f32 %v2730_v8  ;;  %v2745_v13 = vadd.f32 1.0, %v3958_v9 }
 0xb59   : > { %3961 = vtanh.f32 %v2731_v39  ;;  %v2752_v24 = vmul.f32 %v2744_v11, %v2688_v18 }
 0xb5a   : > { %v2753_v25 = vmul.f32 %v2745_v13, %v2689_v3 }
 0xb5e   : > { %v3960_v23 = vpop.eup %3959 }
 0xb5f   : > { %v3962_v14 = vpop.eup %3961  ;;  %v2746_v22 = vadd.f32 1.0, %v3960_v23 }
 0xb60   : > { %v2747_v6 = vadd.f32 1.0, %v3962_v14  ;;  %v3878_v14 = vld [vmem:[%s855_s21] ss:$0 sm:$0xff] }
 0xb61   : > { %v2754_v28 = vmul.f32 %v2746_v22, %v2690_v20 }
 0xb62   : > { %v2755_v21 = vmul.f32 %v2747_v6, %v2691_v19 }
 0xb63   : > { %v2760_v32 = vpack.c.bf16 %v2754_v28, %v2752_v24 }
 0xb64   : > { %v2761_v35 = vpack.c.bf16 %v2755_v21, %v2753_v25 }
 0xb65   : > { %2904 = vmatmul.bf16.vlgmr.msra.gmra.mxu2 %v2760_v32 }
 0xb66   : > { %2923 = vmatmul.bf16.vlgmr.msra.gmra.mxu3 %v2761_v35 }
 0xbb2   : > { %v2664_v40 = vpop.f32.mrf.mxu0  ;;  %v2683_v27 = vpop.f32.mrf.mxu1 }
 0xbb3   : > { %v2665_v42 = vadd.f32 %v2664_v40, %v5213_v51  ;;  %v2684_v43 = vadd.f32 %v2683_v27, %v5215_v53 }
 0xbb5   : > { %v2700_v16 = vmul.f32 0.044715, %v2665_v42  ;;  %v2701_v44 = vmul.f32 0.044715, %v2684_v43  ;;  %v2692_v60 = vmul.f32 0.5, %v2665_v42  ;;  %v2693_v61 = vmul.f32 0.5, %v2684_v43 }
 0xbb7   : > { %v2708_v45 = vmul.f32 %v2700_v16, %v2665_v42  ;;  %v2709_v7 = vmul.f32 %v2701_v44, %v2684_v43 }
 0xbb9   : > { %v2716_v47 = vmul.f32 %v2708_v45, %v2665_v42  ;;  %v2717_v48 = vmul.f32 %v2709_v7, %v2684_v43 }
 0xbba   : > { %v2666_v50 = vpop.f32.mrf.mxu0  ;;  %v2685_v10 = vpop.f32.mrf.mxu1 }
 0xbbb   : > { %v2667_v17 = vadd.f32 %v2666_v50, %v5213_v51  ;;  %v2686_v55 = vadd.f32 %v2685_v10, %v5215_v53  ;;  %v2724_v62 = vadd.f32 %v2716_v47, %v2665_v42  ;;  %v2725_v63 = vadd.f32 %v2717_v48, %v2684_v43 }
 0xbbd   : > { %v2702_v0 = vmul.f32 0.044715, %v2667_v17  ;;  %v2703_v56 = vmul.f32 0.044715, %v2686_v55  ;;  %v2732_v29 = vmul.f32 0.7978846, %v2724_v62 }
 0xbbe   : > { %v2733_v26 = vmul.f32 0.7978846, %v2725_v63  ;;  %v2694_v34 = vmul.f32 0.5, %v2667_v17  ;;  %v2695_v5 = vmul.f32 0.5, %v2686_v55 }
 0xbbf   : > { %v2710_v54 = vmul.f32 %v2702_v0, %v2667_v17  ;;  %v2711_v57 = vmul.f32 %v2703_v56, %v2686_v55  ;;  %3963 = vtanh.f32 %v2732_v29 }
 0xbc0   : > { %3965 = vtanh.f32 %v2733_v26 }
 0xbc1   : > { %v2718_v52 = vmul.f32 %v2710_v54, %v2667_v17  ;;  %v2719_v41 = vmul.f32 %v2711_v57, %v2686_v55 }
 0xbc3   : > { %v2726_v36 = vadd.f32 %v2718_v52, %v2667_v17  ;;  %v2727_v37 = vadd.f32 %v2719_v41, %v2686_v55 }
 0xbc5   : > { %v2734_v2 = vmul.f32 0.7978846, %v2726_v36  ;;  %v2735_v38 = vmul.f32 0.7978846, %v2727_v37  ;;  %v3964_v51 = vpop.eup %3963 }
 0xbc6   : > { %v3966_v53 = vpop.eup %3965  ;;  %v2748_v46 = vadd.f32 1.0, %v3964_v51 }
 0xbc7   : > { %3967 = vtanh.f32 %v2734_v2  ;;  %v2749_v58 = vadd.f32 1.0, %v3966_v53 }
 0xbc8   : > { %3969 = vtanh.f32 %v2735_v38  ;;  %v2756_v39 = vmul.f32 %v2748_v46, %v2692_v60  ;;  %v3879_v60 = vld [vmem:[%s858_s3] ss:$0 sm:$0xff]  ;;  %s5368_s3 = sld [smem:[#allocation25_spill]] }
 0xbc9   : > { %v2757_v9 = vmul.f32 %v2749_v58, %v2693_v61  ;;  %v3880_v61 = vld [vmem:[%s861_s6] ss:$0 sm:$0xff] }
 0xbcd   : > { %v3968_v4 = vpop.eup %3967 }
 0xbce   : > { %v3970_v59 = vpop.eup %3969  ;;  %v2750_v12 = vadd.f32 1.0, %v3968_v4  ;;  %p3646_p10 = scmp.ne.s32.totalorder %s5368_s3, 1 }
 0xbcf   : > { %v2751_v8 = vadd.f32 1.0, %v3970_v59 }
 0xbd0   : > { %v2758_v49 = vmul.f32 %v2750_v12, %v2694_v34 }
 0xbd1   : > { %v2759_v11 = vmul.f32 %v2751_v8, %v2695_v5 }
 0xbd2   : > { %v2762_v23 = vpack.c.bf16 %v2758_v49, %v2756_v39 }
 0xbd3   : > { %v2763_v13 = vpack.c.bf16 %v2759_v11, %v2757_v9 }
 0xbd4   : > { %2909 = vmatmul.bf16.gmra.mxu2 %v2762_v23 }
 0xbd5   : > { %2928 = vmatmul.bf16.gmra.mxu3 %v2763_v13 }
 0xbe8   : > { %v2905_v18 = vpop.f32.mrf.mxu2 }
 0xbe9   : > { %v2906_v20 = vadd.f32 %v3878_v14, %v2905_v18  ;;  %v2924_v22 = vpop.f32.mrf.mxu3 }
 0xbeb   : > { %v2925_v3 = vadd.f32 %v2924_v22, %v2906_v20 }
 0xbed   : > { %v2934_v19 = vadd.f32 %v2925_v3, %v5180_v30 }
 0xbef   : > { %2940 = vadd.xlane.f32.xlu0 %v2934_v19 }
 0xbf0   : > { %v2907_v6 = vpop.f32.mrf.mxu2 }
 0xbf1   : > { %v2908_v24 = vadd.f32 %v3878_v14, %v2907_v6  ;;  %v2926_v28 = vpop.f32.mrf.mxu3 }
 0xbf3   : > { %v2927_v25 = vadd.f32 %v2926_v28, %v2908_v24 }
 0xbf5   : > { %v2935_v21 = vadd.f32 %v2927_v25, %v5182_v1 }
 0xbf7   : > { %2942 = vadd.xlane.f32.xlu1 %v2935_v21 }
 0xc57   : > { %v2910_v32 = vpop.f32.mrf.mxu2 }
 0xc58   : > { %v2911_v35 = vadd.f32 %v3878_v14, %v2910_v32  ;;  %v2929_v40 = vpop.f32.mrf.mxu3 }
 0xc5a   : > { %v2930_v27 = vadd.f32 %v2929_v40, %v2911_v35 }
 0xc5c   : > { %v2936_v42 = vadd.f32 %v2930_v27, %v5196_v15 }
 0xc5e   : > { %2944 = vadd.xlane.f32.xlu2 %v2936_v42 }
 0xc5f   : > { %v2912_v43 = vpop.f32.mrf.mxu2 }
 0xc60   : > { %v2913_v16 = vadd.f32 %v3878_v14, %v2912_v43  ;;  %v2931_v44 = vpop.f32.mrf.mxu3 }
 0xc62   : > { %v2932_v45 = vadd.f32 %v2931_v44, %v2913_v16  ;;  %v2941_v30 = vpop.xlane.xlu0 %2940 }
 0xc63   : > { %v2948_v7 = vmul.f32 %v2941_v30, %v5111_v31 }
 0xc64   : > { %v2937_v47 = vadd.f32 %v2932_v45, %v5198_v33 }
 0xc65   : > { %v2952_v48 = vsub.f32 %v2934_v19, %v2948_v7 }
 0xc66   : > { %2946 = vadd.xlane.f32.xlu0 %v2937_v47 }
 0xc67   : > { %v2956_v1 = vmul.f32 %v2952_v48, %v2952_v48 }
 0xc69   : > { %2960 = vadd.xlane.f32.xlu1 %v2956_v1 }
 0xc6a   : > { %v2943_v50 = vpop.xlane.xlu1 %2942 }
 0xc6b   : > { %v2949_v10 = vmul.f32 %v2943_v50, %v5111_v31 }
 0xc6d   : > { %v2953_v17 = vsub.f32 %v2935_v21, %v2949_v10 }
 0xc6f   : > { %v2957_v55 = vmul.f32 %v2953_v17, %v2953_v17 }
 0xc71   : > { %2962 = vadd.xlane.f32.xlu2 %v2957_v55 }
 0xcd1   : > { %v2945_v15 = vpop.xlane.xlu2 %2944 }
 0xcd2   : > { %v2950_v62 = vmul.f32 %v2945_v15, %v5111_v31 }
 0xcd4   : > { %v5237_v63 = vsub.f32 %v2936_v42, %v2950_v62 }
 0xcd6   : > { %v2958_v0 = vmul.f32 %v5237_v63, %v5237_v63 }
 0xcd8   : > { %2964 = vadd.xlane.f32.xlu0 %v2958_v0 }
 0xcd9   : > { %v2947_v33 = vpop.xlane.xlu0 %2946 }
 0xcda   : > { %v2951_v56 = vmul.f32 %v2947_v33, %v5111_v31 }
 0xcdc   : > { %v5242_v54 = vsub.f32 %v2937_v47, %v2951_v56  ;;  %v2961_v29 = vpop.xlane.xlu1 %2960 }
 0xcdd   : > { %v2968_v57 = vmul.f32 %v2961_v29, %v5111_v31 }
 0xcde   : > { %v2959_v26 = vmul.f32 %v5242_v54, %v5242_v54 }
 0xcdf   : > { %v2972_v52 = vadd.f32 1e-12, %v2968_v57 }
 0xce0   : > { %2966 = vadd.xlane.f32.xlu1 %v2959_v26 }
 0xce1   : > { %3971 = vrsqrt.f32 %v2972_v52  ;;  %vm2982_vm13 = vweird.f32 %v2972_v52 }
 0xce4   : > { %v2963_v41 = vpop.xlane.xlu2 %2962 }
 0xce5   : > { %v2969_v36 = vmul.f32 %v2963_v41, %v5111_v31 }
 0xce7   : > { %v3972_v37 = vpop.eup %3971  ;;  %v2973_v2 = vadd.f32 1e-12, %v2969_v36 }
 0xce8   : > { %v2977_v38 = vmul.f32 %v3972_v37, %v2972_v52  ;;  %vm2983_vm12 = vweird.f32 %v3972_v37 }
 0xce9   : > { %3973 = vrsqrt.f32 %v2973_v2  ;;  %vm2984_vm14 = vmor %vm2982_vm13, %vm2983_vm12  ;;  %vm2992_vm0 = vweird.f32 %v2973_v2 }
 0xcea   : > { %v2978_v51 = vmul.f32 %v3972_v37, %v2977_v38 }
 0xcec   : > { %v2979_v53 = vmul.f32 0.5, %v2978_v51 }
 0xcee   : > { %v2980_v46 = vsub.f32 1.5, %v2979_v53 }
 0xcef   : > { %v3974_v4 = vpop.eup %3973 }
 0xcf0   : > { %v2981_v58 = vmul.f32 %v3972_v37, %v2980_v46  ;;  %v2987_v59 = vmul.f32 %v3974_v4, %v2973_v2  ;;  %vm2993_vm15 = vweird.f32 %v3974_v4 }
 0xcf1   : > { %vm2994_vm1 = vmor %vm2992_vm0, %vm2993_vm15 }
 0xcf2   : > { %v2985_v34 = vsel %vm2984_vm14, %v3972_v37, %v2981_v58  ;;  %v2988_v12 = vmul.f32 %v3974_v4, %v2987_v59 }
 0xcf3   : > { %v3016_v5 = vmul.f32 %v2985_v34, %v2952_v48 }
 0xcf4   : > { %v2989_v8 = vmul.f32 0.5, %v2988_v12 }
 0xcf5   : > { %v3023_v39 = vmul.f32 %v3879_v60, %v3016_v5 }
 0xcf6   : > { %v2990_v49 = vsub.f32 1.5, %v2989_v8 }
 0xcf7   : > { %v3030_v9 = vadd.f32 %v3880_v61, %v3023_v39 }
 0xcf8   : > { %v2991_v11 = vmul.f32 %v3974_v4, %v2990_v49 }
 0xcf9   : > { %3034 = vst [vmem:[#allocation2 + $0x10] sm:$0xff] %v3030_v9 }
 0xcfa   : > { %v2995_v23 = vsel %vm2994_vm1, %v3974_v4, %v2991_v11 }
 0xcfb   : > { %v3017_v13 = vmul.f32 %v2995_v23, %v2953_v17 }
 0xcfd   : > { %v3024_v14 = vmul.f32 %v3879_v60, %v3017_v13 }
 0xcff   : > { %v3031_v18 = vadd.f32 %v3880_v61, %v3024_v14 }
 0xd01   : > { %3035 = vst [vmem:[#allocation2] sm:$0xff] %v3031_v18 }
 0xd4b   : > { %v2965_v20 = vpop.xlane.xlu0 %2964 }
 0xd4c   : > { %v2970_v22 = vmul.f32 %v2965_v20, %v5111_v31 }
 0xd4e   : > { %v2974_v3 = vadd.f32 1e-12, %v2970_v22 }
 0xd50   : > { %3975 = vrsqrt.f32 %v2974_v3  ;;  %vm3002_vm3 = vweird.f32 %v2974_v3 }
 0xd53   : > { %v2967_v19 = vpop.xlane.xlu1 %2966 }
 0xd54   : > { %v2971_v6 = vmul.f32 %v2967_v19, %v5111_v31 }
 0xd56   : > { %v3976_v24 = vpop.eup %3975  ;;  %v2975_v28 = vadd.f32 1e-12, %v2971_v6 }
 0xd57   : > { %v2997_v25 = vmul.f32 %v3976_v24, %v2974_v3  ;;  %vm3003_vm2 = vweird.f32 %v3976_v24 }
 0xd58   : > { %3977 = vrsqrt.f32 %v2975_v28  ;;  %vm3004_vm4 = vmor %vm3002_vm3, %vm3003_vm2  ;;  %vm3012_vm6 = vweird.f32 %v2975_v28 }
 0xd59   : > { %v2998_v21 = vmul.f32 %v3976_v24, %v2997_v25 }
 0xd5b   : > { %v2999_v32 = vmul.f32 0.5, %v2998_v21 }
 0xd5d   : > { %v3000_v35 = vsub.f32 1.5, %v2999_v32 }
 0xd5e   : > { %v3978_v40 = vpop.eup %3977 }
 0xd5f   : > { %v3001_v27 = vmul.f32 %v3976_v24, %v3000_v35  ;;  %v3007_v42 = vmul.f32 %v3978_v40, %v2975_v28  ;;  %vm3013_vm5 = vweird.f32 %v3978_v40 }
 0xd60   : > { %vm3014_vm7 = vmor %vm3012_vm6, %vm3013_vm5 }
 0xd61   : > { %v3005_v43 = vsel %vm3004_vm4, %v3976_v24, %v3001_v27  ;;  %v3008_v16 = vmul.f32 %v3978_v40, %v3007_v42 }
 0xd62   : > { %v3018_v44 = vmul.f32 %v3005_v43, %v5237_v63 }
 0xd63   : > { %v3009_v45 = vmul.f32 0.5, %v3008_v16 }
 0xd64   : > { %v3025_v30 = vmul.f32 %v3879_v60, %v3018_v44 }
 0xd65   : > { %v3010_v31 = vsub.f32 1.5, %v3009_v45 }
 0xd66   : > { %v3032_v7 = vadd.f32 %v3880_v61, %v3025_v30 }
 0xd67   : > { %v3011_v47 = vmul.f32 %v3978_v40, %v3010_v31 }
 0xd68   : > { %3036 = vst [vmem:[#allocation2 + $0x18] sm:$0xff] %v3032_v7 }
 0xd69   : > { %v3015_v48 = vsel %vm3014_vm7, %v3978_v40, %v3011_v47 }
 0xd6a   : > { %v3019_v1 = vmul.f32 %v3015_v48, %v5242_v54 }
 0xd6c   : > { %v3026_v50 = vmul.f32 %v3879_v60, %v3019_v1  ;;  %3041 = sbr.rel (%p3646_p10) target bundleno = 3447 (0xd77), region = 132 }
 0xd6e   : > { %v3033_v10 = vadd.f32 %v3880_v61, %v3026_v50 }
 0xd70   : > { %3037 = vst [vmem:[#allocation2 + $0x8] sm:$0xff] %v3033_v10 }
 0xd71   : > { %v3046_v17 = vrot.slane %v3031_v18, 7  ;;  %vm3047_vm8 = vcmask 1041409   ;;  %v3049_v55 = vrot.slane %v3032_v7, 6  ;;  %vm3050_vm9 = vcmask 1042434  }
 0xd72   : > { %v3052_v15 = vrot.slane %v3033_v10, 5  ;;  %vm3053_vm10 = vcmask 1043459  }
 0xd73   : > { %v3048_v62 = vsel %vm3047_vm8, %v3046_v17, %v3030_v9 }
 0xd74   : > { %v3051_v63 = vsel %vm3050_vm9, %v3049_v55, %v3048_v62 }
 0xd75   : > { %v3054_v0 = vsel %vm3053_vm10, %v3052_v15, %v3051_v63 }
 0xd76   : > { %3056 = vst [vmem:[#allocation17] sm:$0xf] %v3054_v0 }
 0xd77 PF: > { %s5369_s6 = sld [smem:[#allocation25_spill]]  ;;  %s4380_s14 = smov [#allocation17]  }
 0xd78   : > { %s3063_s11 = sshll.u32 %s4380_s14, 4  ;;  %s5370_s13 = sld [smem:[#allocation44_spill]]  ;;  %s3064_s11 = int_to_ptr.vmem [resolvable:$true] %s3063_s11 }
 0xd7d   : > { %p3797_p0 = scmp.eq.s32.totalorder %s5369_s6, 1 }
 0xd7e   : > { %s3065_s18 = sshll.u32 %s5370_s13, 4  ;;  %s3066_s18 = int_to_ptr.hbm [resolvable:$true] %s3065_s18 }
 0xd7f   : > { %3753 = dma.vmem_to_hbm [thread:$0]  (%p3797_p0), %s3064_s11, 64, %s3066_s18, [#allocation5]  }
 0xd80   : > { %4344 = dma.done.wait (%p3797_p0), [#allocation5], 64  }
 0xd81   : > { %4346 = vsyncadd (%p3797_p0), [#allocation5], 4294967232 }
 0xd82 PF: > { %s5371_s24 = sld [smem:[#allocation26_spill]] }
 0xd83   : > { %s5372_s21 = sld [smem:[#allocation23_spill]] }
 0xd84   : > { %s5373_s22 = sld [smem:[#allocation24_spill]] }
 0xd85   : > { %s5374_s23 = sld [smem:[#allocation27_spill]] }
 0xd88   : > { %p27_p2 = scmp.ge.s32.totalorder %s5371_s24, 4  }
 0xd8a   :  { %29 = sbr.rel (!%p27_p2) target bundleno = 21 (0x15), region = 217 }
 0xd8f   :  { %3079 = vsyncpa [#allocation4], 1 }
 0xd90   :  { %3081 = vsyncpa [#allocation4 + $0x1], 1 }
 0xd91   :  { %3082 = vsyncpa [#allocation7], 1 }
 0xd92   :  { %3083 = vsyncpa [#allocation10], 1 }
 0xd93   :  { %3084 = vsyncpa [#allocation5], 1 }
 0xd94   :  { %3086 = vsyncpa [#allocation5 + $0x1], 1 }

</bundles_post_ra>
